<compile_context>
chip_gen: v5e
topology: v5e:2x2
jax: 0.10.0
libtpu: 0.0.40
codegen_flags: <defaults>
</compile_context>

<pallas_src>
import functools

import jax
import jax.numpy as jnp
from jax.experimental import pallas as pl
from jax.experimental.pallas import tpu as pltpu


# ----------------------------- in-kernel helpers -----------------------------

def _gelu(x):
    # tanh-approx GELU (BERT-pytorch GELU module); f32 VPU/EUP math.
    return 0.5 * x * (1.0 + jnp.tanh(0.7978845608028654 *
                                     (x + 0.044715 * x * x * x)))


def _layernorm(x, g, b, eps=1e-6):
    # eps=1e-6 matches BERT-pytorch's custom LayerNorm.
    mean = jnp.mean(x, axis=-1, keepdims=True)
    var = jnp.mean((x - mean) ** 2, axis=-1, keepdims=True)
    return (x - mean) * jax.lax.rsqrt(var + eps) * g + b


def _mxu_dot(a, w_bf16):
    # Activation cast to bf16 at the MXU boundary; weights are already bf16.
    return jnp.dot(a.astype(jnp.bfloat16), w_bf16,
                   preferred_element_type=jnp.float32)


# ----------------------------- fused whole-decoder kernel -----------------------------

def _well_decoder_kernel(x_ref, z_ref,
                         ln1_g_ref, ln1_b_ref, wqkv_ref, bqkv_ref, wo_ref, bo_ref,
                         ln2_g_ref, ln2_b_ref, w1_ref, b1_ref, w2_ref, b2_ref,
                         lin1_w_ref, lin1_b_ref, ada_w_ref, ada_b_ref,
                         c1_w_ref, c1_b_ref, c2_w_ref, c2_b_ref,
                         o_ref, h_sc, *, batch, heads):
    l = pl.program_id(1)
    n_layers = pl.num_programs(1)

    # Layer 0: load the activation slab into VMEM scratch; it stays resident
    # across all layer iterations (no HBM round-trips between layers).
    @pl.when(l == 0)
    def _():
        h_sc[...] = x_ref[...].reshape(h_sc.shape)

    x = h_sc[...]                                   # [B_per*S, H] f32
    bs, hdim = x.shape
    s = bs // batch
    dk = hdim // heads
    scale = 1.0 / float(dk) ** 0.5

    # ---- transformer encoder layer `l` (pre-norm, causal mask) ----
    hn = _layernorm(x, ln1_g_ref[0], ln1_b_ref[0])
    qkv = _mxu_dot(hn, wqkv_ref[0]) + bqkv_ref[0]   # fused [H,3H] matmul -> [B_per*S, 3H]
    q = qkv[:, :hdim]
    k = qkv[:, hdim:2 * hdim]
    v = qkv[:, 2 * hdim:]

    # causal mask == the lower-triangular mask Parameter, generated in-kernel.
    row = jax.lax.broadcasted_iota(jnp.int32, (1, s, s), 1)
    col = jax.lax.broadcasted_iota(jnp.int32, (1, s, s), 2)
    causal = row >= col

    # Attention per batch element (static unroll; batch chunk is 1-2).
    # NOTE: dk=8 under-fills the MXU contraction; acceptable at this head dim,
    # and for long sequences this block would need flash-style KV tiling.
    outs = []
    for bi in range(batch):
        sl = slice(bi * s, (bi + 1) * s)
        q_b = q[sl].reshape(s, heads, dk).astype(jnp.bfloat16)
        k_b = k[sl].reshape(s, heads, dk).astype(jnp.bfloat16)
        v_b = v[sl].reshape(s, heads, dk).astype(jnp.bfloat16)
        sc = jnp.einsum('qhd,khd->hqk', q_b, k_b,
                        preferred_element_type=jnp.float32) * scale
        sc = jnp.where(causal, sc, jnp.float32(-1e9))
        sc = sc - jnp.max(sc, axis=-1, keepdims=True)
        e = jnp.exp(sc)
        # approx reciprocal -> EUP slot (denominator >= 1 after max-subtraction)
        p = e * pl.reciprocal(jnp.sum(e, axis=-1, keepdims=True), approx=True)
        a_b = jnp.einsum('hqk,khd->qhd', p.astype(jnp.bfloat16), v_b,
                         preferred_element_type=jnp.float32)
        outs.append(a_b.reshape(s, hdim))           # lane-dense [S, H] slab
    attn = outs[0] if batch == 1 else jnp.concatenate(outs, axis=0)

    # attention output projection + residual
    x = _mxu_dot(attn, wo_ref[0]) + bo_ref[0] + x
    # pre-norm -> FFN (GELU) -> residual
    hn2 = _layernorm(x, ln2_g_ref[0], ln2_b_ref[0])
    f = _gelu(_mxu_dot(hn2, w1_ref[0]) + b1_ref[0])
    x = _mxu_dot(f, w2_ref[0]) + b2_ref[0] + x
    h_sc[...] = x

    # ---- decoder tail (fused; runs once, after the last layer) ----
    @pl.when(l == n_layers - 1)
    def _():
        cz = z_ref.shape[-1]
        z2 = z_ref[...].reshape(bs, cz)                         # [B_per*S, C]
        # x = linear1(x) + z
        y = _mxu_dot(x, lin1_w_ref[...]) + lin1_b_ref[...] + z2
        c = y.shape[1]
        # AdaInLinear: style (gamma, beta) from z; instance-norm over seq; affine.
        style = _mxu_dot(z2, ada_w_ref[...]) + ada_b_ref[...]   # [B_per*S, 2C]
        gamma, beta = style[:, :c], style[:, c:]
        y3 = y.reshape(batch, s, c)
        mu = jnp.mean(y3, axis=1, keepdims=True)
        var = jnp.mean((y3 - mu) ** 2, axis=1, keepdims=True)
        y3 = (gamma.reshape(batch, s, c) *
              ((y3 - mu) * jax.lax.rsqrt(var + 1e-5)) +
              beta.reshape(batch, s, c))

        def conv3(h3, w_ref_, b_ref_):
            # Conv1d(k=3, padding=1) over the seq axis, channels-last.
            # Shifted copies via sublane concat; the three taps accumulate as
            # three 2-D MXU matmuls (no 3*Cin lane-concat copy).
            zero = jnp.zeros_like(h3[:, :1, :])
            h_m1 = jnp.concatenate([zero, h3[:, :-1, :]], axis=1)   # x[l-1]
            h_p1 = jnp.concatenate([h3[:, 1:, :], zero], axis=1)    # x[l+1]
            bp, s_, cin = h3.shape
            w = w_ref_[...]
            cout = w.shape[-1]

            def mm(a3, wt):
                return jnp.dot(a3.reshape(bp * s_, cin).astype(jnp.bfloat16), wt,
                               preferred_element_type=jnp.float32)

            acc = mm(h_m1, w[0]) + mm(h3, w[1]) + mm(h_p1, w[2])
            return (acc + b_ref_[...]).reshape(bp, s_, cout)

        hmid = _gelu(conv3(y3, c1_w_ref, c1_b_ref))              # [B_per, S, 16]
        o_ref[...] = conv3(hmid, c2_w_ref, c2_b_ref)             # [B_per, S, C]


# ----------------------------- wrapper -----------------------------

_LAYER_ORDER = ("ln1_g", "ln1_b", "wqkv", "bqkv", "wo", "bo",
                "ln2_g", "ln2_b", "w1", "b1", "w2", "b2")
_TAIL_ORDER = ("lin1_w", "lin1_b", "ada_w", "ada_b",
               "c1_w", "c1_b", "c2_w", "c2_b")


def _vmem_limit_bytes():
    # Generation-aware VMEM limit: ~3/4 of physical capacity, capped.
    cap = None
    try:
        info = pltpu.get_tpu_info()
        cap = getattr(info, "vmem_capacity_bytes", None)
    except Exception:
        cap = None
    if not cap:
        cap = 64 * 1024 * 1024          # conservative (v7x-sized) fallback
    return int(min(int(cap) * 3 // 4, 112 * 1024 * 1024))


def well_decoder_forward(params, heads, x, z, *, batch_split=None):
    b_sz, s, hdim = x.shape
    c_out = z.shape[-1]
    n_layers = params["wqkv"].shape[0]
    if batch_split is None:
        # keep a parallel axis divisible by 2 so v7x's two TensorCores split the
        # batch; fold the rest of the batch into the block (bigger MXU M-dim).
        batch_split = 2 if (b_sz % 2 == 0 and b_sz >= 2) else 1
    b_per = b_sz // batch_split

    layer_ws = [params[k] for k in _LAYER_ORDER]
    tail_ws = [params[k] for k in _TAIL_ORDER]

    def layer_spec(a):
        nd = a.ndim
        return pl.BlockSpec((1,) + a.shape[1:],
                            lambda b, l, _nd=nd: (l,) + (0,) * (_nd - 1))

    def const_spec(a):
        nd = a.ndim
        return pl.BlockSpec(a.shape, lambda b, l, _nd=nd: (0,) * _nd)

    x_spec = pl.BlockSpec((b_per, s, hdim), lambda b, l: (b, 0, 0))
    z_spec = pl.BlockSpec((b_per, s, c_out), lambda b, l: (b, 0, 0))
    o_spec = pl.BlockSpec((b_per, s, c_out), lambda b, l: (b, 0, 0))

    kern = functools.partial(_well_decoder_kernel, batch=b_per, heads=heads)
    return pl.pallas_call(
        kern,
        out_shape=jax.ShapeDtypeStruct((b_sz, s, c_out), jnp.float32),
        grid=(batch_split, n_layers),
        in_specs=[x_spec, z_spec]
                 + [layer_spec(w) for w in layer_ws]
                 + [const_spec(w) for w in tail_ws],
        out_specs=o_spec,
        scratch_shapes=[pltpu.VMEM((b_per * s, hdim), jnp.float32)],
        compiler_params=pltpu.CompilerParams(
            dimension_semantics=("parallel", "arbitrary"),
            vmem_limit_bytes=_vmem_limit_bytes()),
    )(x, z, *layer_ws, *tail_ws)


# ----------------------------- params -----------------------------

def init_params(key, hidden, out_channel, seq_len, n_layers, attn_heads):
    del seq_len, attn_heads  # causal mask generated in-kernel; heads passed at call time
    keys = iter(jax.random.split(key, 24))

    def nrm(shape, scale=0.05, dtype=jnp.float32):
        return (scale * jax.random.normal(next(keys), shape, jnp.float32)).astype(dtype)

    L, H, C = n_layers, hidden, out_channel
    wdt = jnp.bfloat16   # pre-cast MXU weights: half the DMA bytes / VMEM residency
    c_hid = 16
    return dict(
        # stacked per-layer weights [L, ...] (streamed along the layer grid axis)
        ln1_g=jnp.ones((L, 1, H), jnp.float32),
        ln1_b=jnp.zeros((L, 1, H), jnp.float32),
        wqkv=nrm((L, H, 3 * H), dtype=wdt), bqkv=nrm((L, 1, 3 * H)),
        wo=nrm((L, H, H), dtype=wdt), bo=nrm((L, 1, H)),
        ln2_g=jnp.ones((L, 1, H), jnp.float32),
        ln2_b=jnp.zeros((L, 1, H), jnp.float32),
        w1=nrm((L, H, 4 * H), dtype=wdt), b1=nrm((L, 1, 4 * H)),
        w2=nrm((L, 4 * H, H), dtype=wdt), b2=nrm((L, 1, H)),
        # decoder tail
        lin1_w=nrm((H, C), dtype=wdt), lin1_b=nrm((1, C)),
        # AdaInLinear style projection from z (z's last dim == out_channel here)
        ada_w=nrm((C, 2 * C), dtype=wdt), ada_b=nrm((1, 2 * C)),
        # Conv1d taps [3, Cin, Cout]: tap t == PyTorch conv.weight[:, :, t].T
        c1_w=nrm((3, C, c_hid), dtype=wdt), c1_b=nrm((1, c_hid)),
        c2_w=nrm((3, c_hid, C), dtype=wdt), c2_b=nrm((1, C)),
    )


if __name__ == "__main__":
    B, S, HID, C_OUT, HEADS, N_LAYERS = 2, 8, 32, 32, 4, 2

    root = jax.random.PRNGKey(0)
    kp, kx, kz = jax.random.split(root, 3)
    params = init_params(kp, HID, C_OUT, S, N_LAYERS, HEADS)

    x = jax.random.normal(kx, (B, S, HID), jnp.float32)
    z = jax.random.normal(kz, (B, S, C_OUT), jnp.float32)

    fwd = jax.jit(functools.partial(well_decoder_forward, params, HEADS))
    out = fwd(x, z)
    jax.block_until_ready(out)

    assert out.shape == (B, S, C_OUT), out.shape
    assert bool(jnp.all(jnp.isfinite(out)))
    print("KERNEL_OK")
</pallas_src>

<mosaic_0001>
module attributes {stable_mosaic.version = 11 : i64} {
  func.func @_well_decoder_kernel(%arg0: i32, %arg1: i32, %arg2: memref<1x8x32xf32, #tpu.memory_space<vmem>>, %arg3: memref<1x8x32xf32, #tpu.memory_space<vmem>>, %arg4: memref<1x1x32xf32, #tpu.memory_space<vmem>>, %arg5: memref<1x1x32xf32, #tpu.memory_space<vmem>>, %arg6: memref<1x32x96xbf16, #tpu.memory_space<vmem>>, %arg7: memref<1x1x96xf32, #tpu.memory_space<vmem>>, %arg8: memref<1x32x32xbf16, #tpu.memory_space<vmem>>, %arg9: memref<1x1x32xf32, #tpu.memory_space<vmem>>, %arg10: memref<1x1x32xf32, #tpu.memory_space<vmem>>, %arg11: memref<1x1x32xf32, #tpu.memory_space<vmem>>, %arg12: memref<1x32x128xbf16, #tpu.memory_space<vmem>>, %arg13: memref<1x1x128xf32, #tpu.memory_space<vmem>>, %arg14: memref<1x128x32xbf16, #tpu.memory_space<vmem>>, %arg15: memref<1x1x32xf32, #tpu.memory_space<vmem>>, %arg16: memref<32x32xbf16, #tpu.memory_space<vmem>>, %arg17: memref<1x32xf32, #tpu.memory_space<vmem>>, %arg18: memref<32x64xbf16, #tpu.memory_space<vmem>>, %arg19: memref<1x64xf32, #tpu.memory_space<vmem>>, %arg20: memref<3x32x16xbf16, #tpu.memory_space<vmem>>, %arg21: memref<1x16xf32, #tpu.memory_space<vmem>>, %arg22: memref<3x16x32xbf16, #tpu.memory_space<vmem>>, %arg23: memref<1x32xf32, #tpu.memory_space<vmem>>, %arg24: memref<1x8x32xf32, #tpu.memory_space<vmem>>, %arg25: memref<8x32xf32, #tpu.memory_space<vmem>>) attributes {dimension_semantics = [#tpu.dimension_semantics<parallel>, #tpu.dimension_semantics<arbitrary>], iteration_bounds = array<i64: 2, 2>, scalar_prefetch = 0 : i64, scratch_operands = 1 : i64, tpu.core_type = #tpu.core_type<tc>, window_params = [{transform_indices = @transform_0, window_bounds = array<i64: 1, 8, 32>}, {transform_indices = @transform_1, window_bounds = array<i64: 1, 8, 32>}, {transform_indices = @transform_2, window_bounds = array<i64: 1, 1, 32>}, {transform_indices = @transform_3, window_bounds = array<i64: 1, 1, 32>}, {transform_indices = @transform_4, window_bounds = array<i64: 1, 32, 96>}, {transform_indices = @transform_5, window_bounds = array<i64: 1, 1, 96>}, {transform_indices = @transform_6, window_bounds = array<i64: 1, 32, 32>}, {transform_indices = @transform_7, window_bounds = array<i64: 1, 1, 32>}, {transform_indices = @transform_8, window_bounds = array<i64: 1, 1, 32>}, {transform_indices = @transform_9, window_bounds = array<i64: 1, 1, 32>}, {transform_indices = @transform_10, window_bounds = array<i64: 1, 32, 128>}, {transform_indices = @transform_11, window_bounds = array<i64: 1, 1, 128>}, {transform_indices = @transform_12, window_bounds = array<i64: 1, 128, 32>}, {transform_indices = @transform_13, window_bounds = array<i64: 1, 1, 32>}, {pipeline_mode = #tpu.pipeline_mode<synchronous>, transform_indices = @transform_14, window_bounds = array<i64: 32, 32>}, {pipeline_mode = #tpu.pipeline_mode<synchronous>, transform_indices = @transform_15, window_bounds = array<i64: 1, 32>}, {pipeline_mode = #tpu.pipeline_mode<synchronous>, transform_indices = @transform_16, window_bounds = array<i64: 32, 64>}, {pipeline_mode = #tpu.pipeline_mode<synchronous>, transform_indices = @transform_17, window_bounds = array<i64: 1, 64>}, {pipeline_mode = #tpu.pipeline_mode<synchronous>, transform_indices = @transform_18, window_bounds = array<i64: 3, 32, 16>}, {pipeline_mode = #tpu.pipeline_mode<synchronous>, transform_indices = @transform_19, window_bounds = array<i64: 1, 16>}, {pipeline_mode = #tpu.pipeline_mode<synchronous>, transform_indices = @transform_20, window_bounds = array<i64: 3, 16, 32>}, {pipeline_mode = #tpu.pipeline_mode<synchronous>, transform_indices = @transform_21, window_bounds = array<i64: 1, 32>}, {transform_indices = @transform_22, window_bounds = array<i64: 1, 8, 32>}]} {
    %c0_i32 = arith.constant 0 : i32
    %0 = arith.cmpi eq, %arg1, %c0_i32 : i32
    %1 = arith.extui %0 : i1 to i32
    %c0_i32_0 = arith.constant 0 : i32
    %2 = arith.cmpi ne, %1, %c0_i32_0 : i32
    scf.if %2 {
      %c0_64 = arith.constant 0 : index
      %c0_65 = arith.constant 0 : index
      %c0_66 = arith.constant 0 : index
      %140 = vector.load %arg2[%c0_64, %c0_65, %c0_66] : memref<1x8x32xf32, #tpu.memory_space<vmem>>, vector<1x8x32xf32>
      %141 = vector.shape_cast %140 : vector<1x8x32xf32> to vector<8x32xf32>
      %c0_67 = arith.constant 0 : index
      %c0_68 = arith.constant 0 : index
      %142 = vector.load %arg25[%c0_67, %c0_68] : memref<8x32xf32, #tpu.memory_space<vmem>>, vector<8x32xf32>
      tpu.vector_store %arg25[%c0_67, %c0_68], %141 {strides = array<i32>} : memref<8x32xf32, #tpu.memory_space<vmem>>, vector<8x32xf32>,
    } else {
    }
    %c0 = arith.constant 0 : index
    %c0_1 = arith.constant 0 : index
    %3 = vector.load %arg25[%c0, %c0_1] : memref<8x32xf32, #tpu.memory_space<vmem>>, vector<8x32xf32>
    %c0_2 = arith.constant 0 : index
    %c0_3 = arith.constant 0 : index
    %c0_4 = arith.constant 0 : index
    %4 = vector.load %arg4[%c0_2, %c0_3, %c0_4] : memref<1x1x32xf32, #tpu.memory_space<vmem>>, vector<1x1x32xf32>
    %5 = vector.shape_cast %4 : vector<1x1x32xf32> to vector<1x32xf32>
    %c0_5 = arith.constant 0 : index
    %c0_6 = arith.constant 0 : index
    %c0_7 = arith.constant 0 : index
    %6 = vector.load %arg5[%c0_5, %c0_6, %c0_7] : memref<1x1x32xf32, #tpu.memory_space<vmem>>, vector<1x1x32xf32>
    %7 = vector.shape_cast %6 : vector<1x1x32xf32> to vector<1x32xf32>
    %cst = arith.constant dense<0.000000e+00> : vector<8xf32>
    %8 = vector.multi_reduction <add>, %3, %cst [1] : vector<8x32xf32> to vector<8xf32>
    %9 = vector.shape_cast %8 : vector<8xf32> to vector<8x1xf32>
    %cst_8 = arith.constant 3.200000e+01 : f32
    %10 = vector.broadcast %cst_8 : f32 to vector<8x1xf32>
    %11 = arith.divf %9, %10 : vector<8x1xf32>
    %12 = vector.broadcast %11 : vector<8x1xf32> to vector<8x32xf32>
    %13 = arith.subf %3, %12 : vector<8x32xf32>
    %14 = arith.mulf %13, %13 : vector<8x32xf32>
    %cst_9 = arith.constant dense<0.000000e+00> : vector<8xf32>
    %15 = vector.multi_reduction <add>, %14, %cst_9 [1] : vector<8x32xf32> to vector<8xf32>
    %16 = vector.shape_cast %15 : vector<8xf32> to vector<8x1xf32>
    %cst_10 = arith.constant 3.200000e+01 : f32
    %17 = vector.broadcast %cst_10 : f32 to vector<8x1xf32>
    %18 = arith.divf %16, %17 : vector<8x1xf32>
    %19 = vector.broadcast %11 : vector<8x1xf32> to vector<8x32xf32>
    %20 = arith.subf %3, %19 : vector<8x32xf32>
    %cst_11 = arith.constant 9.99999997E-7 : f32
    %21 = vector.broadcast %cst_11 : f32 to vector<8x1xf32>
    %22 = arith.addf %18, %21 : vector<8x1xf32>
    %23 = math.rsqrt %22 : vector<8x1xf32>
    %24 = vector.broadcast %23 : vector<8x1xf32> to vector<8x32xf32>
    %25 = arith.mulf %20, %24 : vector<8x32xf32>
    %26 = vector.broadcast %5 : vector<1x32xf32> to vector<8x32xf32>
    %27 = arith.mulf %25, %26 : vector<8x32xf32>
    %28 = vector.broadcast %7 : vector<1x32xf32> to vector<8x32xf32>
    %29 = arith.addf %27, %28 : vector<8x32xf32>
    %c0_12 = arith.constant 0 : index
    %c0_13 = arith.constant 0 : index
    %c0_14 = arith.constant 0 : index
    %30 = vector.load %arg6[%c0_12, %c0_13, %c0_14] : memref<1x32x96xbf16, #tpu.memory_space<vmem>>, vector<1x32x96xbf16>
    %31 = vector.shape_cast %30 : vector<1x32x96xbf16> to vector<32x96xbf16>
    %32 = arith.truncf %29 : vector<8x32xf32> to vector<8x32xbf16>
    %cst_15 = arith.constant dense<0.000000e+00> : vector<8x96xf32>
    %33 = tpu.matmul %32, %31, %cst_15 {dimension_numbers = #tpu.dot_dimension_numbers<[1], [0], [0], [1], [0, 0, 1, 1], [], []>} : vector<8x32xbf16>, vector<32x96xbf16>, vector<8x96xf32> -> vector<8x96xf32>
    %c0_16 = arith.constant 0 : index
    %c0_17 = arith.constant 0 : index
    %c0_18 = arith.constant 0 : index
    %34 = vector.load %arg7[%c0_16, %c0_17, %c0_18] : memref<1x1x96xf32, #tpu.memory_space<vmem>>, vector<1x1x96xf32>
    %35 = vector.shape_cast %34 : vector<1x1x96xf32> to vector<1x96xf32>
    %36 = vector.broadcast %35 : vector<1x96xf32> to vector<8x96xf32>
    %37 = arith.addf %33, %36 : vector<8x96xf32>
    %38 = vector.extract_strided_slice %37 {offsets = [0, 0], sizes = [8, 32], strides = [1, 1]} : vector<8x96xf32> to vector<8x32xf32>
    %39 = vector.extract_strided_slice %37 {offsets = [0, 32], sizes = [8, 32], strides = [1, 1]} : vector<8x96xf32> to vector<8x32xf32>
    %40 = vector.extract_strided_slice %37 {offsets = [0, 64], sizes = [8, 32], strides = [1, 1]} : vector<8x96xf32> to vector<8x32xf32>
    %41 = tpu.iota {dimensions = array<i32: 1>} : vector<1x8x8xi32>
    %42 = tpu.iota {dimensions = array<i32: 2>} : vector<1x8x8xi32>
    %43 = arith.cmpi sge, %41, %42 : vector<1x8x8xi32>
    %44 = vector.shape_cast %38 : vector<8x32xf32> to vector<8x4x8xf32>
    %45 = arith.truncf %44 : vector<8x4x8xf32> to vector<8x4x8xbf16>
    %46 = vector.shape_cast %39 : vector<8x32xf32> to vector<8x4x8xf32>
    %47 = arith.truncf %46 : vector<8x4x8xf32> to vector<8x4x8xbf16>
    %48 = vector.shape_cast %40 : vector<8x32xf32> to vector<8x4x8xf32>
    %49 = arith.truncf %48 : vector<8x4x8xf32> to vector<8x4x8xbf16>
    "tpu.trace_start"() <{level = 10 : i32, message = "qhd,khd->hqk"}> : () -> ()
    %cst_19 = arith.constant dense<0.000000e+00> : vector<4x8x8xf32>
    %50 = tpu.matmul %45, %47, %cst_19 {dimension_numbers = #tpu.dot_dimension_numbers<[2], [2], [0], [0], [0, 1, 0, 0, 1, 0], [1], [1]>} : vector<8x4x8xbf16>, vector<8x4x8xbf16>, vector<4x8x8xf32> -> vector<4x8x8xf32>
    "tpu.trace_stop"() : () -> ()
    %cst_20 = arith.constant 0.353553385 : f32
    %51 = vector.broadcast %cst_20 : f32 to vector<4x8x8xf32>
    %52 = arith.mulf %50, %51 : vector<4x8x8xf32>
    %cst_21 = arith.constant -1.000000e+09 : f32
    %53 = vector.shape_cast %43 : vector<1x8x8xi1> to vector<1x8x8xi1>
    %54 = vector.broadcast %53 : vector<1x8x8xi1> to vector<4x8x8xi1>
    %55 = vector.broadcast %cst_21 : f32 to vector<4x8x8xf32>
    %56 = arith.select %54, %52, %55 : vector<4x8x8xi1>, vector<4x8x8xf32>
    %cst_22 = arith.constant dense<0xFF800000> : vector<4x8xf32>
    %57 = vector.multi_reduction <maximumf>, %56, %cst_22 [2] : vector<4x8x8xf32> to vector<4x8xf32>
    %58 = vector.shape_cast %57 : vector<4x8xf32> to vector<4x8x1xf32>
    %59 = vector.broadcast %58 : vector<4x8x1xf32> to vector<4x8x8xf32>
    %60 = arith.subf %56, %59 : vector<4x8x8xf32>
    %61 = math.exp %60 : vector<4x8x8xf32>
    %cst_23 = arith.constant dense<0.000000e+00> : vector<4x8xf32>
    %62 = vector.multi_reduction <add>, %61, %cst_23 [2] : vector<4x8x8xf32> to vector<4x8xf32>
    %63 = vector.shape_cast %62 : vector<4x8xf32> to vector<4x8x1xf32>
    %64 = tpu.reciprocal %63 {approx = true} : vector<4x8x1xf32> -> vector<4x8x1xf32>
    %65 = vector.broadcast %64 : vector<4x8x1xf32> to vector<4x8x8xf32>
    %66 = arith.mulf %61, %65 : vector<4x8x8xf32>
    %67 = arith.truncf %66 : vector<4x8x8xf32> to vector<4x8x8xbf16>
    "tpu.trace_start"() <{level = 10 : i32, message = "hqk,khd->qhd"}> : () -> ()
    %cst_24 = arith.constant dense<0.000000e+00> : vector<4x8x8xf32>
    %68 = tpu.matmul %49, %67, %cst_24 {dimension_numbers = #tpu.dot_dimension_numbers<[0], [2], [2], [1], [0, 1, 0, 2, 1, 1], [1], [0]>} : vector<8x4x8xbf16>, vector<4x8x8xbf16>, vector<4x8x8xf32> -> vector<4x8x8xf32>
    %69 = tpu.transpose %68, [2, 0, 1] : vector<4x8x8xf32> -> vector<8x4x8xf32>
    "tpu.trace_stop"() : () -> ()
    %70 = vector.shape_cast %69 : vector<8x4x8xf32> to vector<8x32xf32>
    %c0_25 = arith.constant 0 : index
    %c0_26 = arith.constant 0 : index
    %c0_27 = arith.constant 0 : index
    %71 = vector.load %arg8[%c0_25, %c0_26, %c0_27] : memref<1x32x32xbf16, #tpu.memory_space<vmem>>, vector<1x32x32xbf16>
    %72 = vector.shape_cast %71 : vector<1x32x32xbf16> to vector<32x32xbf16>
    %73 = arith.truncf %70 : vector<8x32xf32> to vector<8x32xbf16>
    %cst_28 = arith.constant dense<0.000000e+00> : vector<8x32xf32>
    %74 = tpu.matmul %73, %72, %cst_28 {dimension_numbers = #tpu.dot_dimension_numbers<[1], [0], [0], [1], [0, 0, 1, 1], [], []>} : vector<8x32xbf16>, vector<32x32xbf16>, vector<8x32xf32> -> vector<8x32xf32>
    %c0_29 = arith.constant 0 : index
    %c0_30 = arith.constant 0 : index
    %c0_31 = arith.constant 0 : index
    %75 = vector.load %arg9[%c0_29, %c0_30, %c0_31] : memref<1x1x32xf32, #tpu.memory_space<vmem>>, vector<1x1x32xf32>
    %76 = vector.shape_cast %75 : vector<1x1x32xf32> to vector<1x32xf32>
    %77 = vector.broadcast %76 : vector<1x32xf32> to vector<8x32xf32>
    %78 = arith.addf %74, %77 : vector<8x32xf32>
    %79 = arith.addf %78, %3 : vector<8x32xf32>
    %c0_32 = arith.constant 0 : index
    %c0_33 = arith.constant 0 : index
    %c0_34 = arith.constant 0 : index
    %80 = vector.load %arg10[%c0_32, %c0_33, %c0_34] : memref<1x1x32xf32, #tpu.memory_space<vmem>>, vector<1x1x32xf32>
    %81 = vector.shape_cast %80 : vector<1x1x32xf32> to vector<1x32xf32>
    %c0_35 = arith.constant 0 : index
    %c0_36 = arith.constant 0 : index
    %c0_37 = arith.constant 0 : index
    %82 = vector.load %arg11[%c0_35, %c0_36, %c0_37] : memref<1x1x32xf32, #tpu.memory_space<vmem>>, vector<1x1x32xf32>
    %83 = vector.shape_cast %82 : vector<1x1x32xf32> to vector<1x32xf32>
    %cst_38 = arith.constant dense<0.000000e+00> : vector<8xf32>
    %84 = vector.multi_reduction <add>, %79, %cst_38 [1] : vector<8x32xf32> to vector<8xf32>
    %85 = vector.shape_cast %84 : vector<8xf32> to vector<8x1xf32>
    %cst_39 = arith.constant 3.200000e+01 : f32
    %86 = vector.broadcast %cst_39 : f32 to vector<8x1xf32>
    %87 = arith.divf %85, %86 : vector<8x1xf32>
    %88 = vector.broadcast %87 : vector<8x1xf32> to vector<8x32xf32>
    %89 = arith.subf %79, %88 : vector<8x32xf32>
    %90 = arith.mulf %89, %89 : vector<8x32xf32>
    %cst_40 = arith.constant dense<0.000000e+00> : vector<8xf32>
    %91 = vector.multi_reduction <add>, %90, %cst_40 [1] : vector<8x32xf32> to vector<8xf32>
    %92 = vector.shape_cast %91 : vector<8xf32> to vector<8x1xf32>
    %cst_41 = arith.constant 3.200000e+01 : f32
    %93 = vector.broadcast %cst_41 : f32 to vector<8x1xf32>
    %94 = arith.divf %92, %93 : vector<8x1xf32>
    %95 = vector.broadcast %87 : vector<8x1xf32> to vector<8x32xf32>
    %96 = arith.subf %79, %95 : vector<8x32xf32>
    %cst_42 = arith.constant 9.99999997E-7 : f32
    %97 = vector.broadcast %cst_42 : f32 to vector<8x1xf32>
    %98 = arith.addf %94, %97 : vector<8x1xf32>
    %99 = math.rsqrt %98 : vector<8x1xf32>
    %100 = vector.broadcast %99 : vector<8x1xf32> to vector<8x32xf32>
    %101 = arith.mulf %96, %100 : vector<8x32xf32>
    %102 = vector.broadcast %81 : vector<1x32xf32> to vector<8x32xf32>
    %103 = arith.mulf %101, %102 : vector<8x32xf32>
    %104 = vector.broadcast %83 : vector<1x32xf32> to vector<8x32xf32>
    %105 = arith.addf %103, %104 : vector<8x32xf32>
    %c0_43 = arith.constant 0 : index
    %c0_44 = arith.constant 0 : index
    %c0_45 = arith.constant 0 : index
    %106 = vector.load %arg12[%c0_43, %c0_44, %c0_45] : memref<1x32x128xbf16, #tpu.memory_space<vmem>>, vector<1x32x128xbf16>
    %107 = vector.shape_cast %106 : vector<1x32x128xbf16> to vector<32x128xbf16>
    %108 = arith.truncf %105 : vector<8x32xf32> to vector<8x32xbf16>
    %cst_46 = arith.constant dense<0.000000e+00> : vector<8x128xf32>
    %109 = tpu.matmul %108, %107, %cst_46 {dimension_numbers = #tpu.dot_dimension_numbers<[1], [0], [0], [1], [0, 0, 1, 1], [], []>} : vector<8x32xbf16>, vector<32x128xbf16>, vector<8x128xf32> -> vector<8x128xf32>
    %c0_47 = arith.constant 0 : index
    %c0_48 = arith.constant 0 : index
    %c0_49 = arith.constant 0 : index
    %110 = vector.load %arg13[%c0_47, %c0_48, %c0_49] : memref<1x1x128xf32, #tpu.memory_space<vmem>>, vector<1x1x128xf32>
    %111 = vector.shape_cast %110 : vector<1x1x128xf32> to vector<1x128xf32>
    %112 = vector.broadcast %111 : vector<1x128xf32> to vector<8x128xf32>
    %113 = arith.addf %109, %112 : vector<8x128xf32>
    %cst_50 = arith.constant 5.000000e-01 : f32
    %114 = vector.broadcast %cst_50 : f32 to vector<8x128xf32>
    %115 = arith.mulf %114, %113 : vector<8x128xf32>
    %cst_51 = arith.constant 4.471500e-02 : f32
    %116 = vector.broadcast %cst_51 : f32 to vector<8x128xf32>
    %117 = arith.mulf %116, %113 : vector<8x128xf32>
    %118 = arith.mulf %117, %113 : vector<8x128xf32>
    %119 = arith.mulf %118, %113 : vector<8x128xf32>
    %120 = arith.addf %113, %119 : vector<8x128xf32>
    %cst_52 = arith.constant 0.797884583 : f32
    %121 = vector.broadcast %cst_52 : f32 to vector<8x128xf32>
    %122 = arith.mulf %121, %120 : vector<8x128xf32>
    %123 = math.tanh %122 : vector<8x128xf32>
    %cst_53 = arith.constant 1.000000e+00 : f32
    %124 = vector.broadcast %cst_53 : f32 to vector<8x128xf32>
    %125 = arith.addf %124, %123 : vector<8x128xf32>
    %126 = arith.mulf %115, %125 : vector<8x128xf32>
    %c0_54 = arith.constant 0 : index
    %c0_55 = arith.constant 0 : index
    %c0_56 = arith.constant 0 : index
    %127 = vector.load %arg14[%c0_54, %c0_55, %c0_56] : memref<1x128x32xbf16, #tpu.memory_space<vmem>>, vector<1x128x32xbf16>
    %128 = vector.shape_cast %127 : vector<1x128x32xbf16> to vector<128x32xbf16>
    %129 = arith.truncf %126 : vector<8x128xf32> to vector<8x128xbf16>
    %cst_57 = arith.constant dense<0.000000e+00> : vector<8x32xf32>
    %130 = tpu.matmul %129, %128, %cst_57 {dimension_numbers = #tpu.dot_dimension_numbers<[1], [0], [0], [1], [0, 0, 1, 1], [], []>} : vector<8x128xbf16>, vector<128x32xbf16>, vector<8x32xf32> -> vector<8x32xf32>
    %c0_58 = arith.constant 0 : index
    %c0_59 = arith.constant 0 : index
    %c0_60 = arith.constant 0 : index
    %131 = vector.load %arg15[%c0_58, %c0_59, %c0_60] : memref<1x1x32xf32, #tpu.memory_space<vmem>>, vector<1x1x32xf32>
    %132 = vector.shape_cast %131 : vector<1x1x32xf32> to vector<1x32xf32>
    %133 = vector.broadcast %132 : vector<1x32xf32> to vector<8x32xf32>
    %134 = arith.addf %130, %133 : vector<8x32xf32>
    %135 = arith.addf %134, %79 : vector<8x32xf32>
    %c0_61 = arith.constant 0 : index
    %c0_62 = arith.constant 0 : index
    %136 = vector.load %arg25[%c0_61, %c0_62] : memref<8x32xf32, #tpu.memory_space<vmem>>, vector<8x32xf32>
    tpu.vector_store %arg25[%c0_61, %c0_62], %135 {strides = array<i32>} : memref<8x32xf32, #tpu.memory_space<vmem>>, vector<8x32xf32>,
    %c1_i32 = arith.constant 1 : i32
    %137 = arith.cmpi eq, %arg1, %c1_i32 : i32
    %138 = arith.extui %137 : i1 to i32
    %c0_i32_63 = arith.constant 0 : i32
    %139 = arith.cmpi ne, %138, %c0_i32_63 : i32
    scf.if %139 {
      %c0_64 = arith.constant 0 : index
      %c0_65 = arith.constant 0 : index
      %c0_66 = arith.constant 0 : index
      %140 = vector.load %arg3[%c0_64, %c0_65, %c0_66] : memref<1x8x32xf32, #tpu.memory_space<vmem>>, vector<1x8x32xf32>
      %141 = vector.shape_cast %140 : vector<1x8x32xf32> to vector<8x32xf32>
      %c0_67 = arith.constant 0 : index
      %c0_68 = arith.constant 0 : index
      %142 = vector.load %arg16[%c0_67, %c0_68] : memref<32x32xbf16, #tpu.memory_space<vmem>>, vector<32x32xbf16>
      %143 = arith.truncf %135 : vector<8x32xf32> to vector<8x32xbf16>
      %cst_69 = arith.constant dense<0.000000e+00> : vector<8x32xf32>
      %144 = tpu.matmul %143, %142, %cst_69 {dimension_numbers = #tpu.dot_dimension_numbers<[1], [0], [0], [1], [0, 0, 1, 1], [], []>} : vector<8x32xbf16>, vector<32x32xbf16>, vector<8x32xf32> -> vector<8x32xf32>
      %c0_70 = arith.constant 0 : index
      %c0_71 = arith.constant 0 : index
      %145 = vector.load %arg17[%c0_70, %c0_71] : memref<1x32xf32, #tpu.memory_space<vmem>>, vector<1x32xf32>
      %146 = vector.broadcast %145 : vector<1x32xf32> to vector<8x32xf32>
      %147 = arith.addf %144, %146 : vector<8x32xf32>
      %148 = arith.addf %147, %141 : vector<8x32xf32>
      %c0_72 = arith.constant 0 : index
      %c0_73 = arith.constant 0 : index
      %149 = vector.load %arg18[%c0_72, %c0_73] : memref<32x64xbf16, #tpu.memory_space<vmem>>, vector<32x64xbf16>
      %150 = arith.truncf %141 : vector<8x32xf32> to vector<8x32xbf16>
      %cst_74 = arith.constant dense<0.000000e+00> : vector<8x64xf32>
      %151 = tpu.matmul %150, %149, %cst_74 {dimension_numbers = #tpu.dot_dimension_numbers<[1], [0], [0], [1], [0, 0, 1, 1], [], []>} : vector<8x32xbf16>, vector<32x64xbf16>, vector<8x64xf32> -> vector<8x64xf32>
      %c0_75 = arith.constant 0 : index
      %c0_76 = arith.constant 0 : index
      %152 = vector.load %arg19[%c0_75, %c0_76] : memref<1x64xf32, #tpu.memory_space<vmem>>, vector<1x64xf32>
      %153 = vector.broadcast %152 : vector<1x64xf32> to vector<8x64xf32>
      %154 = arith.addf %151, %153 : vector<8x64xf32>
      %155 = vector.extract_strided_slice %154 {offsets = [0, 0], sizes = [8, 32], strides = [1, 1]} : vector<8x64xf32> to vector<8x32xf32>
      %156 = vector.extract_strided_slice %154 {offsets = [0, 32], sizes = [8, 32], strides = [1, 1]} : vector<8x64xf32> to vector<8x32xf32>
      %157 = vector.shape_cast %148 : vector<8x32xf32> to vector<1x8x32xf32>
      %cst_77 = arith.constant dense<0.000000e+00> : vector<1x32xf32>
      %158 = vector.multi_reduction <add>, %157, %cst_77 [1] : vector<1x8x32xf32> to vector<1x32xf32>
      %159 = vector.shape_cast %158 : vector<1x32xf32> to vector<1x1x32xf32>
      %cst_78 = arith.constant 8.000000e+00 : f32
      %160 = vector.broadcast %cst_78 : f32 to vector<1x1x32xf32>
      %161 = arith.divf %159, %160 : vector<1x1x32xf32>
      %162 = vector.broadcast %161 : vector<1x1x32xf32> to vector<1x8x32xf32>
      %163 = arith.subf %157, %162 : vector<1x8x32xf32>
      %164 = arith.mulf %163, %163 : vector<1x8x32xf32>
      %cst_79 = arith.constant dense<0.000000e+00> : vector<1x32xf32>
      %165 = vector.multi_reduction <add>, %164, %cst_79 [1] : vector<1x8x32xf32> to vector<1x32xf32>
      %166 = vector.shape_cast %165 : vector<1x32xf32> to vector<1x1x32xf32>
      %cst_80 = arith.constant 8.000000e+00 : f32
      %167 = vector.broadcast %cst_80 : f32 to vector<1x1x32xf32>
      %168 = arith.divf %166, %167 : vector<1x1x32xf32>
      %169 = vector.shape_cast %155 : vector<8x32xf32> to vector<1x8x32xf32>
      %170 = vector.broadcast %161 : vector<1x1x32xf32> to vector<1x8x32xf32>
      %171 = arith.subf %157, %170 : vector<1x8x32xf32>
      %cst_81 = arith.constant 9.99999974E-6 : f32
      %172 = vector.broadcast %cst_81 : f32 to vector<1x1x32xf32>
      %173 = arith.addf %168, %172 : vector<1x1x32xf32>
      %174 = math.rsqrt %173 : vector<1x1x32xf32>
      %175 = vector.broadcast %174 : vector<1x1x32xf32> to vector<1x8x32xf32>
      %176 = arith.mulf %171, %175 : vector<1x8x32xf32>
      %177 = arith.mulf %169, %176 : vector<1x8x32xf32>
      %178 = vector.shape_cast %156 : vector<8x32xf32> to vector<1x8x32xf32>
      %179 = arith.addf %177, %178 : vector<1x8x32xf32>
      %cst_82 = arith.constant 0.000000e+00 : f32
      %180 = vector.broadcast %cst_82 : f32 to vector<1x1x32xf32>
      %181 = vector.extract_strided_slice %179 {offsets = [0, 0, 0], sizes = [1, 7, 32], strides = [1, 1, 1]} : vector<1x8x32xf32> to vector<1x7x32xf32>
      %182 = tpu.concatenate %180, %181 in 1 : vector<1x1x32xf32>, vector<1x7x32xf32> -> vector<1x8x32xf32>
      %183 = vector.extract_strided_slice %179 {offsets = [0, 1, 0], sizes = [1, 7, 32], strides = [1, 1, 1]} : vector<1x8x32xf32> to vector<1x7x32xf32>
      %184 = tpu.concatenate %183, %180 in 1 : vector<1x7x32xf32>, vector<1x1x32xf32> -> vector<1x8x32xf32>
      %c0_83 = arith.constant 0 : index
      %c0_84 = arith.constant 0 : index
      %c0_85 = arith.constant 0 : index
      %185 = vector.load %arg20[%c0_83, %c0_84, %c0_85] : memref<3x32x16xbf16, #tpu.memory_space<vmem>>, vector<3x32x16xbf16>
      %186 = vector.extract_strided_slice %185 {offsets = [0, 0, 0], sizes = [1, 32, 16], strides = [1, 1, 1]} : vector<3x32x16xbf16> to vector<1x32x16xbf16>
      %187 = vector.shape_cast %186 : vector<1x32x16xbf16> to vector<32x16xbf16>
      %188 = vector.shape_cast %182 : vector<1x8x32xf32> to vector<8x32xf32>
      %189 = arith.truncf %188 : vector<8x32xf32> to vector<8x32xbf16>
      %cst_86 = arith.constant dense<0.000000e+00> : vector<8x16xf32>
      %190 = tpu.matmul %189, %187, %cst_86 {dimension_numbers = #tpu.dot_dimension_numbers<[1], [0], [0], [1], [0, 0, 1, 1], [], []>} : vector<8x32xbf16>, vector<32x16xbf16>, vector<8x16xf32> -> vector<8x16xf32>
      %191 = vector.extract_strided_slice %185 {offsets = [1, 0, 0], sizes = [1, 32, 16], strides = [1, 1, 1]} : vector<3x32x16xbf16> to vector<1x32x16xbf16>
      %192 = vector.shape_cast %191 : vector<1x32x16xbf16> to vector<32x16xbf16>
      %193 = vector.shape_cast %179 : vector<1x8x32xf32> to vector<8x32xf32>
      %194 = arith.truncf %193 : vector<8x32xf32> to vector<8x32xbf16>
      %cst_87 = arith.constant dense<0.000000e+00> : vector<8x16xf32>
      %195 = tpu.matmul %194, %192, %cst_87 {dimension_numbers = #tpu.dot_dimension_numbers<[1], [0], [0], [1], [0, 0, 1, 1], [], []>} : vector<8x32xbf16>, vector<32x16xbf16>, vector<8x16xf32> -> vector<8x16xf32>
      %196 = arith.addf %190, %195 : vector<8x16xf32>
      %197 = vector.extract_strided_slice %185 {offsets = [2, 0, 0], sizes = [1, 32, 16], strides = [1, 1, 1]} : vector<3x32x16xbf16> to vector<1x32x16xbf16>
      %198 = vector.shape_cast %197 : vector<1x32x16xbf16> to vector<32x16xbf16>
      %199 = vector.shape_cast %184 : vector<1x8x32xf32> to vector<8x32xf32>
      %200 = arith.truncf %199 : vector<8x32xf32> to vector<8x32xbf16>
      %cst_88 = arith.constant dense<0.000000e+00> : vector<8x16xf32>
      %201 = tpu.matmul %200, %198, %cst_88 {dimension_numbers = #tpu.dot_dimension_numbers<[1], [0], [0], [1], [0, 0, 1, 1], [], []>} : vector<8x32xbf16>, vector<32x16xbf16>, vector<8x16xf32> -> vector<8x16xf32>
      %202 = arith.addf %196, %201 : vector<8x16xf32>
      %c0_89 = arith.constant 0 : index
      %c0_90 = arith.constant 0 : index
      %203 = vector.load %arg21[%c0_89, %c0_90] : memref<1x16xf32, #tpu.memory_space<vmem>>, vector<1x16xf32>
      %204 = vector.broadcast %203 : vector<1x16xf32> to vector<8x16xf32>
      %205 = arith.addf %202, %204 : vector<8x16xf32>
      %206 = vector.shape_cast %205 : vector<8x16xf32> to vector<1x8x16xf32>
      %cst_91 = arith.constant 5.000000e-01 : f32
      %207 = vector.broadcast %cst_91 : f32 to vector<1x8x16xf32>
      %208 = arith.mulf %207, %206 : vector<1x8x16xf32>
      %cst_92 = arith.constant 4.471500e-02 : f32
      %209 = vector.broadcast %cst_92 : f32 to vector<1x8x16xf32>
      %210 = arith.mulf %209, %206 : vector<1x8x16xf32>
      %211 = arith.mulf %210, %206 : vector<1x8x16xf32>
      %212 = arith.mulf %211, %206 : vector<1x8x16xf32>
      %213 = arith.addf %206, %212 : vector<1x8x16xf32>
      %cst_93 = arith.constant 0.797884583 : f32
      %214 = vector.broadcast %cst_93 : f32 to vector<1x8x16xf32>
      %215 = arith.mulf %214, %213 : vector<1x8x16xf32>
      %216 = math.tanh %215 : vector<1x8x16xf32>
      %cst_94 = arith.constant 1.000000e+00 : f32
      %217 = vector.broadcast %cst_94 : f32 to vector<1x8x16xf32>
      %218 = arith.addf %217, %216 : vector<1x8x16xf32>
      %219 = arith.mulf %208, %218 : vector<1x8x16xf32>
      %cst_95 = arith.constant 0.000000e+00 : f32
      %220 = vector.broadcast %cst_95 : f32 to vector<1x1x16xf32>
      %221 = vector.extract_strided_slice %219 {offsets = [0, 0, 0], sizes = [1, 7, 16], strides = [1, 1, 1]} : vector<1x8x16xf32> to vector<1x7x16xf32>
      %222 = tpu.concatenate %220, %221 in 1 : vector<1x1x16xf32>, vector<1x7x16xf32> -> vector<1x8x16xf32>
      %223 = vector.extract_strided_slice %219 {offsets = [0, 1, 0], sizes = [1, 7, 16], strides = [1, 1, 1]} : vector<1x8x16xf32> to vector<1x7x16xf32>
      %224 = tpu.concatenate %223, %220 in 1 : vector<1x7x16xf32>, vector<1x1x16xf32> -> vector<1x8x16xf32>
      %c0_96 = arith.constant 0 : index
      %c0_97 = arith.constant 0 : index
      %c0_98 = arith.constant 0 : index
      %225 = vector.load %arg22[%c0_96, %c0_97, %c0_98] : memref<3x16x32xbf16, #tpu.memory_space<vmem>>, vector<3x16x32xbf16>
      %226 = vector.extract_strided_slice %225 {offsets = [0, 0, 0], sizes = [1, 16, 32], strides = [1, 1, 1]} : vector<3x16x32xbf16> to vector<1x16x32xbf16>
      %227 = vector.shape_cast %226 : vector<1x16x32xbf16> to vector<16x32xbf16>
      %228 = vector.shape_cast %222 : vector<1x8x16xf32> to vector<8x16xf32>
      %229 = arith.truncf %228 : vector<8x16xf32> to vector<8x16xbf16>
      %cst_99 = arith.constant dense<0.000000e+00> : vector<8x32xf32>
      %230 = tpu.matmul %229, %227, %cst_99 {dimension_numbers = #tpu.dot_dimension_numbers<[1], [0], [0], [1], [0, 0, 1, 1], [], []>} : vector<8x16xbf16>, vector<16x32xbf16>, vector<8x32xf32> -> vector<8x32xf32>
      %231 = vector.extract_strided_slice %225 {offsets = [1, 0, 0], sizes = [1, 16, 32], strides = [1, 1, 1]} : vector<3x16x32xbf16> to vector<1x16x32xbf16>
      %232 = vector.shape_cast %231 : vector<1x16x32xbf16> to vector<16x32xbf16>
      %233 = vector.shape_cast %219 : vector<1x8x16xf32> to vector<8x16xf32>
      %234 = arith.truncf %233 : vector<8x16xf32> to vector<8x16xbf16>
      %cst_100 = arith.constant dense<0.000000e+00> : vector<8x32xf32>
      %235 = tpu.matmul %234, %232, %cst_100 {dimension_numbers = #tpu.dot_dimension_numbers<[1], [0], [0], [1], [0, 0, 1, 1], [], []>} : vector<8x16xbf16>, vector<16x32xbf16>, vector<8x32xf32> -> vector<8x32xf32>
      %236 = arith.addf %230, %235 : vector<8x32xf32>
      %237 = vector.extract_strided_slice %225 {offsets = [2, 0, 0], sizes = [1, 16, 32], strides = [1, 1, 1]} : vector<3x16x32xbf16> to vector<1x16x32xbf16>
      %238 = vector.shape_cast %237 : vector<1x16x32xbf16> to vector<16x32xbf16>
      %239 = vector.shape_cast %224 : vector<1x8x16xf32> to vector<8x16xf32>
      %240 = arith.truncf %239 : vector<8x16xf32> to vector<8x16xbf16>
      %cst_101 = arith.constant dense<0.000000e+00> : vector<8x32xf32>
      %241 = tpu.matmul %240, %238, %cst_101 {dimension_numbers = #tpu.dot_dimension_numbers<[1], [0], [0], [1], [0, 0, 1, 1], [], []>} : vector<8x16xbf16>, vector<16x32xbf16>, vector<8x32xf32> -> vector<8x32xf32>
      %242 = arith.addf %236, %241 : vector<8x32xf32>
      %c0_102 = arith.constant 0 : index
      %c0_103 = arith.constant 0 : index
      %243 = vector.load %arg23[%c0_102, %c0_103] : memref<1x32xf32, #tpu.memory_space<vmem>>, vector<1x32xf32>
      %244 = vector.broadcast %243 : vector<1x32xf32> to vector<8x32xf32>
      %245 = arith.addf %242, %244 : vector<8x32xf32>
      %246 = vector.shape_cast %245 : vector<8x32xf32> to vector<1x8x32xf32>
      %c0_104 = arith.constant 0 : index
      %c0_105 = arith.constant 0 : index
      %c0_106 = arith.constant 0 : index
      %247 = vector.load %arg24[%c0_104, %c0_105, %c0_106] : memref<1x8x32xf32, #tpu.memory_space<vmem>>, vector<1x8x32xf32>
      tpu.vector_store %arg24[%c0_104, %c0_105, %c0_106], %246 {strides = array<i32>} : memref<1x8x32xf32, #tpu.memory_space<vmem>>, vector<1x8x32xf32>,
    } else {
    }
    return
  }
  func.func @transform_0(%arg0: i32, %arg1: i32) -> (i32, i32, i32) {
    %c0_i32 = arith.constant 0 : i32
    %c0_i32_0 = arith.constant 0 : i32
    %c0_i32_1 = arith.constant 0 : i32
    return %arg0, %c0_i32, %c0_i32_0 : i32, i32, i32
  }
  func.func @transform_1(%arg0: i32, %arg1: i32) -> (i32, i32, i32) {
    %c0_i32 = arith.constant 0 : i32
    %c0_i32_0 = arith.constant 0 : i32
    %c0_i32_1 = arith.constant 0 : i32
    return %arg0, %c0_i32, %c0_i32_0 : i32, i32, i32
  }
  func.func @transform_2(%arg0: i32, %arg1: i32) -> (i32, i32, i32) {
    %c0_i32 = arith.constant 0 : i32
    %c0_i32_0 = arith.constant 0 : i32
    %c0_i32_1 = arith.constant 0 : i32
    return %arg1, %c0_i32, %c0_i32_0 : i32, i32, i32
  }
  func.func @transform_3(%arg0: i32, %arg1: i32) -> (i32, i32, i32) {
    %c0_i32 = arith.constant 0 : i32
    %c0_i32_0 = arith.constant 0 : i32
    %c0_i32_1 = arith.constant 0 : i32
    return %arg1, %c0_i32, %c0_i32_0 : i32, i32, i32
  }
  func.func @transform_4(%arg0: i32, %arg1: i32) -> (i32, i32, i32) {
    %c0_i32 = arith.constant 0 : i32
    %c0_i32_0 = arith.constant 0 : i32
    %c0_i32_1 = arith.constant 0 : i32
    return %arg1, %c0_i32, %c0_i32_0 : i32, i32, i32
  }
  func.func @transform_5(%arg0: i32, %arg1: i32) -> (i32, i32, i32) {
    %c0_i32 = arith.constant 0 : i32
    %c0_i32_0 = arith.constant 0 : i32
    %c0_i32_1 = arith.constant 0 : i32
    return %arg1, %c0_i32, %c0_i32_0 : i32, i32, i32
  }
  func.func @transform_6(%arg0: i32, %arg1: i32) -> (i32, i32, i32) {
    %c0_i32 = arith.constant 0 : i32
    %c0_i32_0 = arith.constant 0 : i32
    %c0_i32_1 = arith.constant 0 : i32
    return %arg1, %c0_i32, %c0_i32_0 : i32, i32, i32
  }
  func.func @transform_7(%arg0: i32, %arg1: i32) -> (i32, i32, i32) {
    %c0_i32 = arith.constant 0 : i32
    %c0_i32_0 = arith.constant 0 : i32
    %c0_i32_1 = arith.constant 0 : i32
    return %arg1, %c0_i32, %c0_i32_0 : i32, i32, i32
  }
  func.func @transform_8(%arg0: i32, %arg1: i32) -> (i32, i32, i32) {
    %c0_i32 = arith.constant 0 : i32
    %c0_i32_0 = arith.constant 0 : i32
    %c0_i32_1 = arith.constant 0 : i32
    return %arg1, %c0_i32, %c0_i32_0 : i32, i32, i32
  }
  func.func @transform_9(%arg0: i32, %arg1: i32) -> (i32, i32, i32) {
    %c0_i32 = arith.constant 0 : i32
    %c0_i32_0 = arith.constant 0 : i32
    %c0_i32_1 = arith.constant 0 : i32
    return %arg1, %c0_i32, %c0_i32_0 : i32, i32, i32
  }
  func.func @transform_10(%arg0: i32, %arg1: i32) -> (i32, i32, i32) {
    %c0_i32 = arith.constant 0 : i32
    %c0_i32_0 = arith.constant 0 : i32
    %c0_i32_1 = arith.constant 0 : i32
    return %arg1, %c0_i32, %c0_i32_0 : i32, i32, i32
  }
  func.func @transform_11(%arg0: i32, %arg1: i32) -> (i32, i32, i32) {
    %c0_i32 = arith.constant 0 : i32
    %c0_i32_0 = arith.constant 0 : i32
    %c0_i32_1 = arith.constant 0 : i32
    return %arg1, %c0_i32, %c0_i32_0 : i32, i32, i32
  }
  func.func @transform_12(%arg0: i32, %arg1: i32) -> (i32, i32, i32) {
    %c0_i32 = arith.constant 0 : i32
    %c0_i32_0 = arith.constant 0 : i32
    %c0_i32_1 = arith.constant 0 : i32
    return %arg1, %c0_i32, %c0_i32_0 : i32, i32, i32
  }
  func.func @transform_13(%arg0: i32, %arg1: i32) -> (i32, i32, i32) {
    %c0_i32 = arith.constant 0 : i32
    %c0_i32_0 = arith.constant 0 : i32
    %c0_i32_1 = arith.constant 0 : i32
    return %arg1, %c0_i32, %c0_i32_0 : i32, i32, i32
  }
  func.func @transform_14(%arg0: i32, %arg1: i32) -> (i32, i32) {
    %c0_i32 = arith.constant 0 : i32
    %c0_i32_0 = arith.constant 0 : i32
    %c0_i32_1 = arith.constant 0 : i32
    return %c0_i32, %c0_i32_0 : i32, i32
  }
  func.func @transform_15(%arg0: i32, %arg1: i32) -> (i32, i32) {
    %c0_i32 = arith.constant 0 : i32
    %c0_i32_0 = arith.constant 0 : i32
    %c0_i32_1 = arith.constant 0 : i32
    return %c0_i32, %c0_i32_0 : i32, i32
  }
  func.func @transform_16(%arg0: i32, %arg1: i32) -> (i32, i32) {
    %c0_i32 = arith.constant 0 : i32
    %c0_i32_0 = arith.constant 0 : i32
    %c0_i32_1 = arith.constant 0 : i32
    return %c0_i32, %c0_i32_0 : i32, i32
  }
  func.func @transform_17(%arg0: i32, %arg1: i32) -> (i32, i32) {
    %c0_i32 = arith.constant 0 : i32
    %c0_i32_0 = arith.constant 0 : i32
    %c0_i32_1 = arith.constant 0 : i32
    return %c0_i32, %c0_i32_0 : i32, i32
  }
  func.func @transform_18(%arg0: i32, %arg1: i32) -> (i32, i32, i32) {
    %c0_i32 = arith.constant 0 : i32
    %c0_i32_0 = arith.constant 0 : i32
    %c0_i32_1 = arith.constant 0 : i32
    %c0_i32_2 = arith.constant 0 : i32
    return %c0_i32, %c0_i32_0, %c0_i32_1 : i32, i32, i32
  }
  func.func @transform_19(%arg0: i32, %arg1: i32) -> (i32, i32) {
    %c0_i32 = arith.constant 0 : i32
    %c0_i32_0 = arith.constant 0 : i32
    %c0_i32_1 = arith.constant 0 : i32
    return %c0_i32, %c0_i32_0 : i32, i32
  }
  func.func @transform_20(%arg0: i32, %arg1: i32) -> (i32, i32, i32) {
    %c0_i32 = arith.constant 0 : i32
    %c0_i32_0 = arith.constant 0 : i32
    %c0_i32_1 = arith.constant 0 : i32
    %c0_i32_2 = arith.constant 0 : i32
    return %c0_i32, %c0_i32_0, %c0_i32_1 : i32, i32, i32
  }
  func.func @transform_21(%arg0: i32, %arg1: i32) -> (i32, i32) {
    %c0_i32 = arith.constant 0 : i32
    %c0_i32_0 = arith.constant 0 : i32
    %c0_i32_1 = arith.constant 0 : i32
    return %c0_i32, %c0_i32_0 : i32, i32
  }
  func.func @transform_22(%arg0: i32, %arg1: i32) -> (i32, i32, i32) {
    %c0_i32 = arith.constant 0 : i32
    %c0_i32_0 = arith.constant 0 : i32
    %c0_i32_1 = arith.constant 0 : i32
    return %arg0, %c0_i32, %c0_i32_0 : i32, i32, i32
  }
}

</mosaic_0001>

<bundles_post_ra>
// kernel: well_decoder_forward.1
= control target key start
LH: loop header
LB: loop body
LE: loop exit
PB: predicated region body
PF: predicated region fallthrough
CT: control target
= control target key end

     0   :  { %s5740_s0 = inlined_call_operand.hbm [shape: f32[2,8,32], index: 0, kind: input, shape index: {}]   ;;  %s5741_s1 = inlined_call_operand.hbm [shape: f32[2,8,32], index: 1, kind: input, shape index: {}]   ;;  %s5742_s2 = inlined_call_operand.vmem [shape: f32[2,1,32], index: 2, kind: input, shape index: {}, may-alias: {2,8}]   ;;  %s5743_s3 = inlined_call_operand.vmem [shape: f32[2,1,32], index: 3, kind: input, shape index: {}, may-alias: {3,9}]   ;;  %s5744_s4 = inlined_call_operand.hbm [shape: bf16[2,32,96], index: 4, kind: input, shape index: {}]   ;;  %s5745_s5 = inlined_call_operand.hbm [shape: f32[2,1,96], index: 5, kind: input, shape index: {}]   ;;  %s5746_s6 = inlined_call_operand.hbm [shape: bf16[2,32,32], index: 6, kind: input, shape index: {}]   ;;  %s5747_s7 = inlined_call_operand.hbm [shape: f32[2,1,32], index: 7, kind: input, shape index: {}]   ;;  %s5748_s8 = inlined_call_operand.vmem [shape: f32[2,1,32], index: 8, kind: input, shape index: {}, may-alias: {2,8}]   ;;  %s5749_s9 = inlined_call_operand.vmem [shape: f32[2,1,32], index: 9, kind: input, shape index: {}, may-alias: {3,9}]   ;;  %s5750_s10 = inlined_call_operand.hbm [shape: bf16[2,32,128], index: 10, kind: input, shape index: {}]   ;;  %s5751_s11 = inlined_call_operand.hbm [shape: f32[2,1,128], index: 11, kind: input, shape index: {}]   ;;  %s5752_s12 = inlined_call_operand.hbm [shape: bf16[2,128,32], index: 12, kind: input, shape index: {}]   ;;  %s5753_s13 = inlined_call_operand.vmem [shape: f32[2,1,32], index: 13, kind: input, shape index: {}]   ;;  %s5754_s14 = inlined_call_operand.hbm [shape: bf16[32,32], index: 14, kind: input, shape index: {}]   ;;  %s5755_s15 = inlined_call_operand.hbm [shape: f32[1,32], index: 15, kind: input, shape index: {}]   ;;  %s5756_s16 = inlined_call_operand.vmem [shape: bf16[32,64], index: 16, kind: input, shape index: {}]   ;;  %s5757_s17 = inlined_call_operand.hbm [shape: f32[1,64], index: 17, kind: input, shape index: {}]   ;;  %s5758_s18 = inlined_call_operand.hbm [shape: bf16[3,32,16], index: 18, kind: input, shape index: {}]   ;;  %s5759_s19 = inlined_call_operand.vmem [shape: f32[1,16], index: 19, kind: input, shape index: {}]   ;;  %s5760_s20 = inlined_call_operand.hbm [shape: bf16[3,16,32], index: 20, kind: input, shape index: {}]   ;;  %s5761_s21 = inlined_call_operand.vmem [shape: f32[1,32], index: 21, kind: input, shape index: {}]   ;;  %s5762_s22 = inlined_call_operand.hbm [shape: f32[2,8,32], index: 22, kind: output, shape index: {}]  }
   0x1   :  { %5793 = sst [smem:[#allocation51_spill]] %s5740_s0 }
   0x2   :  { %5794 = sst [smem:[#allocation52_spill]] %s5741_s1 }
   0x3   :  { %5795 = sst [smem:[#allocation53_spill]] %s5742_s2 }
   0x4   :  { %5796 = sst [smem:[#allocation54_spill]] %s5743_s3 }
   0x5   :  { %5797 = sst [smem:[#allocation55_spill]] %s5744_s4 }
   0x6   :  { %5798 = sst [smem:[#allocation56_spill]] %s5745_s5 }
   0x7   :  { %5799 = sst [smem:[#allocation57_spill]] %s5746_s6 }
   0x8   :  { %5800 = sst [smem:[#allocation58_spill]] %s5747_s7 }
   0x9   :  { %5801 = sst [smem:[#allocation59_spill]] %s5748_s8 }
   0xa   :  { %5802 = sst [smem:[#allocation60_spill]] %s5749_s9 }
   0xb   :  { %5803 = sst [smem:[#allocation61_spill]] %s5750_s10 }
   0xc   :  { %5804 = sst [smem:[#allocation62_spill]] %s5751_s11 }
   0xd   :  { %5805 = sst [smem:[#allocation63_spill]] %s5752_s12 }
   0xe   :  { %5806 = sst [smem:[#allocation64_spill]] %s5753_s13 }
   0xf   :  { %5807 = sst [smem:[#allocation65_spill]] %s5754_s14 }
  0x10   :  { %5808 = sst [smem:[#allocation66_spill]] %s5755_s15 }
  0x11   :  { %5809 = sst [smem:[#allocation67_spill]] %s5756_s16 }
  0x12   :  { %5810 = sst [smem:[#allocation68_spill]] %s5757_s17 }
  0x13   :  { %5811 = sst [smem:[#allocation69_spill]] %s5758_s18 }
  0x14   :  { %5812 = sst [smem:[#allocation70_spill]] %s5759_s19 }
  0x15   :  { %5813 = sst [smem:[#allocation71_spill]] %s5761_s21 }
  0x16   :  { %5814 = sst [smem:[#allocation72_spill]] %s5762_s22 }
  0x17   :  { %27 = vsyncpa [#allocation4], 0 }
  0x18   :  { %29 = vsyncpa [#allocation4 + $0x1], 0 }
  0x19   :  { %30 = vsyncpa [#allocation7], 0 }
  0x1a   :  { %32 = vsyncpa [#allocation7 + $0x1], 0 }
  0x1b   :  { %33 = vsyncpa [#allocation10], 0 }
  0x1c   :  { %35 = vsyncpa [#allocation10 + $0x1], 0 }
  0x1d   :  { %36 = vsyncpa [#allocation13], 0 }
  0x1e   :  { %38 = vsyncpa [#allocation13 + $0x1], 0 }
  0x1f   :  { %39 = vsyncpa [#allocation16], 0 }
  0x20   :  { %41 = vsyncpa [#allocation16 + $0x1], 0 }
  0x21   :  { %42 = vsyncpa [#allocation19], 0 }
  0x22   :  { %43 = vsyncpa [#allocation22], 0 }
  0x23   :  { %44 = vsyncpa [#allocation25], 0 }
  0x24   :  { %45 = vsyncpa [#allocation5], 0 }
  0x25   :  { %47 = vsyncpa [#allocation5 + $0x1], 0  ;;  %s4925_s3 = smov 0   ;;  %s4927_s28 = smov 0  }
  0x26   :  { %s4929_s29 = smov 0   ;;  %s4931_s30 = smov 0  }
  0x27   :  { %s4933_s4 = smov 0   ;;  %s4935_s0 = smov 0  }
  0x28   :  { %s4937_s23 = smov 0   ;;  %s4939_s1 = smov 0  }
  0x29   :  { %s4941_s5 = smov 0   ;;  %s4943_s24 = smov 0  }
  0x2a   :  { %s4945_s6 = smov 0  }
  0x2b LB: > { %5815 = sst [smem:[#allocation37_spill]] %s4752_s28  ;;  %s4981_s25 = sadd.s32 4294967295, %s4788_s6   ;;  %s4788_s6 = sphi %s4945_s6, %s53_s6   ;;  %s4784_s24 = sphi %s4943_s24, %s5911_s24   ;;  %s4780_s5 = sphi %s4941_s5, %s5910_s5   ;;  %s4776_s1 = sphi %s4939_s1, %s5909_s1   ;;  %s4772_s23 = sphi %s4937_s23, %s5908_s23   ;;  %s4768_s0 = sphi %s4935_s0, %s5907_s0   ;;  %s4764_s4 = sphi %s4933_s4, %s5906_s4   ;;  %s4760_s30 = sphi %s4931_s30, %s5905_s30   ;;  %s4756_s29 = sphi %s4929_s29, %s5901_s29   ;;  %s4752_s28 = sphi %s4927_s28, %s5900_s28   ;;  %s4748_s3 = sphi %s4925_s3, %s5899_s3  }
  0x2c   : > { %5816 = sst [smem:[#allocation38_spill]] %s4756_s29  ;;  %p3679_p0 = scmp.ge.s32.totalorder %s4788_s6, 1 }
  0x2d   : > { %5817 = sst [smem:[#allocation39_spill]] %s4760_s30  ;;  %p86_p1 = scmp.eq.s32.totalorder %s4981_s25, 0 }
  0x2e   : > { %5818 = sst [smem:[#allocation40_spill]] %s4772_s23  ;;  %p628_p2 = scmp.lt.s32.totalorder %s4788_s6, 5 }
  0x2f   : > { %5819 = sst [smem:[#allocation41_spill]] %s4776_s1  ;;  %s4790_s1 = smov [#allocation18]  }
  0x30   : > { %5820 = sst [smem:[#allocation42_spill]] %s4788_s6  ;;  %p4989_p3 = pnand %p3679_p0, %p628_p2 }
  0x31   : > { %5821 = sst [smem:[#allocation43_spill]] %s4981_s25  ;;  %s641_s21 = sshll.u32 %s4790_s1, 4  ;;  %s642_s21 = int_to_ptr.vmem [resolvable:$true] %s641_s21 }
  0x32   : > { %s5822_s14 = sld [smem:[#allocation65_spill]]  ;;  %p3919_p4 = pneg %p4989_p3 }
  0x33   : > { %s5825_s17 = sld [smem:[#allocation68_spill]]  ;;  %s5765_s16 = smov 64  }
  0x34   : > { %p4997_p5 = pnand %p3919_p4, %p86_p1  ;;  %s5767_s1 = smov 4  }
  0x35   : > { %s4793_s13 = smov [#allocation21]   ;;  %s3678_s2 = sadd.s32 4294967294, %s4788_s6  }
  0x36   : > { %p5771_p7 = scmp.ne.s32.totalorder %s4768_s0, %s4764_s4  ;;  %p80_p8 = scmp.eq.s32.totalorder %s4788_s6, 0 }
  0x37   : > { %p5770_p9 = scmp.ne.s32.totalorder %s4764_s4, %s4760_s30  ;;  %p183_p0 = scmp.ne.s32.totalorder %s4756_s29, %s4752_s28 }
  0x38   : > { %s639_s27 = sshll.u32 %s5822_s14, 4  ;;  %s671_s14 = sshll.u32 %s4793_s13, 4  ;;  %s640_s27 = int_to_ptr.hbm [resolvable:$true] %s639_s27  ;;  %s672_s14 = int_to_ptr.vmem [resolvable:$true] %s671_s14 }
  0x39   : > { %s669_s19 = sshll.u32 %s5825_s17, 4  ;;  %s62_s17 = sadd.s32 1, %s4780_s5  ;;  %s670_s19 = int_to_ptr.hbm [resolvable:$true] %s669_s19 }
  0x3a   : > { %3922 = dma.hbm_to_vmem [thread:$0]  (!%p4997_p5), %s640_s27, 256, %s642_s21, [#allocation19], %s5765_s16, %s5765_s16, %s5767_s1  }
  0x3b   : > { %3928 = dma.hbm_to_vmem [thread:$0]  (!%p4997_p5), %s670_s19, 16, %s672_s14, [#allocation22]  }
  0x3c   : > { %p63_p6 = scmp.ge.s32.totalorder %s62_s17, 2  ;;  %s65_s21 = sadd.s32 1, %s4784_s24 }
  0x3d   : > { %s72_s27 = sadd.s32 1, %s4768_s0  ;;  %p5030_p11 = por %p80_p8, %p5771_p7 }
  0x3e   : > { %s5913_s17 = smov (%p63_p6, %s62_s17), 0  ;;  %s5915_s21 = smov (!%p63_p6, %s65_s21), %s4784_s24 }
  0x3f   : > { %5826 = sst [smem:[#allocation44_spill]] %s5913_s17  ;;  %p67_p10 = scmp.ge.s32.totalorder %s5915_s21, 2 }
  0x40   : > { %s173_s13 = ssub.s32 %s4780_s5, %s5913_s17  ;;  %p5039_p12 = por %p86_p1, %p5770_p9 }
  0x41   : > { %s5917_s21 = smov (%p67_p10, %s5915_s21), 0  ;;  %p174_p13 = scmp.eq.s32.totalorder %s173_s13, 0 }
  0x42   : > { %s5828_s14 = scalar_select %p5039_p12, 1, 0 }
  0x43   : > { %5829 = sst [smem:[#allocation45_spill]] %s5917_s21  ;;  %s176_s16 = sadd.s32 1, %s4756_s29 }
  0x44   : > { %s69_s1 = ssub.s32 %s4784_s24, %s5917_s21  ;;  %p189_p4 = scmp.ne.s32.totalorder %s4752_s28, %s4748_s3 }
  0x45   : > { %p70_p2 = scmp.eq.s32.totalorder %s69_s1, 0  ;;  %p5060_p6 = por %p183_p0, %p80_p8 }
  0x46   : > { %s5053_s17 = scalar_select %p174_p13, %s4756_s29, %s176_s16  }
  0x47   : > { %s5056_s9 = scalar_select %p70_p2, %s4768_s0, %s72_s27  }
  0x48   : > { %5830 = sst [smem:[#allocation46_spill]] %s5053_s17  ;;  %p5066_p10 = por %p189_p4, %p86_p1 }
  0x49   : > { %5831 = sst [smem:[#allocation47_spill]] %s5056_s9  ;;  %p615_p9 = scmp.eq.s32.totalorder %s4981_s25, 3 }
  0x4a   : > { %s5833_s13 = scalar_select %p5066_p10, 1, 0 }
  0x4b   : > { %p621_p7 = scmp.eq.s32.totalorder %s3678_s2, 3  ;;  %p3972_p12 = scmp.lt.s32.totalorder %s4788_s6, 4 }
  0x4c   : > { %5834 = sst [smem:[#allocation48_spill]] %s5833_s13  ;;  %s5778_s3 = sand.u32 1, %s4768_s0  }
  0x4d   : > { %p5835_p13 = scmp.ne.s32.totalorder %s4768_s0, %s4764_s4  ;;  %p5838_p8 = scmp.ne.s32.totalorder %s4764_s4, %s4760_s30 }
  0x4e   : > { %s5089_s27 = sshll.u32 %s5778_s3, 3  ;;  %s5784_s2 = sshll.u32 %s4784_s24, 3 }
  0x4f   : > { %p5076_p2 = por %p615_p9, %p5835_p13  ;;  %p5083_p0 = por %p621_p7, %p5838_p8 }
  0x50   : > { %p5096_p4 = pnand %p3972_p12, %p5030_p11  ;;  %s5101_s9 = sand.u32 1, %s4788_s6  }
  0x51   : > { %s5836_s16 = scalar_select %p5076_p2, 1, 0 }
  0x52   : > { %s5839_s1 = scalar_select %p5083_p0, 1, 0 }
  0x53   : > { %5837 = sst [smem:[#allocation49_spill]] %s5836_s16  ;;  %s739_s23 = scalar_lea.vmem [#allocation6], %s5089_s27 }
  0x54   : > { %5840 = sst [smem:[#allocation50_spill]] %s5839_s1  ;;  %s747_s19 = sshll.u32 %s739_s23, 4  ;;  %s748_s19 = int_to_ptr.vmem [resolvable:$true] %s747_s19 }
  0x55   : > { %s5842_s16 = sld [smem:[#allocation52_spill]]  ;;  %s5783_s13 = scalar_lea.sflag [#allocation7], %s5101_s9 }
  0x56   : > { %p5118_p7 = pnand %p3972_p12, %p5060_p6  ;;  %s5123_s17 = sand.u32 1, %s4756_s29  }
  0x57   : > { %s791_s8 = scalar_lea.vmem [#allocation9], %s5123_s17  ;;  %s5845_s7 = sld [smem:[#allocation58_spill]] }
  0x58   : > { %s5846_s11 = sld [smem:[#allocation62_spill]]  ;;  %s5857_s26 = scalar_lea.sflag [#allocation10], %s5101_s9 }
  0x59   : > { %s5847_s15 = sld [smem:[#allocation66_spill]]  ;;  %s3851_s21 = sshll.u32 %s4780_s5, 6 }
  0x5a   : > { %s5848_s18 = sld [smem:[#allocation69_spill]] }
  0x5b   : > { %s743_s1 = scalar_lea.hbm %s5842_s16, %s5784_s2  ;;  %s830_s16 = scalar_lea.vmem [#allocation12], %s5123_s17 }
  0x5c   : > { %s745_s3 = sshll.u32 %s743_s1, 4  ;;  %s5844_s1 = sld [smem:[#allocation56_spill]]  ;;  %s746_s3 = int_to_ptr.hbm [resolvable:$true] %s745_s3 }
  0x5d   : > { %3941 = dma.hbm_to_vmem [thread:$0]  (!%p5096_p4), %s746_s3, 128, %s748_s19, %s5783_s13  }
  0x5e   : > { %s798_s19 = sshll.u32 %s791_s8, 4  ;;  %s5790_s13 = scalar_lea.sflag [#allocation10], %s5101_s9  ;;  %s799_s19 = int_to_ptr.vmem [resolvable:$true] %s798_s19 }
  0x5f   : > { %s833_s30 = scalar_lea.hbm %s5845_s7, %s4780_s5  ;;  %s5791_s2 = scalar_lea.sflag [#allocation16], %s5101_s9 }
  0x60   : > { %s835_s6 = sshll.u32 %s833_s30, 4  ;;  %s654_s7 = sshll.u32 %s5847_s15, 4  ;;  %s836_s6 = int_to_ptr.hbm [resolvable:$true] %s835_s6  ;;  %s655_s7 = int_to_ptr.hbm [resolvable:$true] %s654_s7 }
  0x61   : > { %s4796_s8 = smov [#allocation24]   ;;  %s720_s30 = scalar_lea.vmem [#allocation3], %s5089_s27 }
  0x62   : > { %s794_s23 = scalar_lea.hbm %s5844_s1, %s4780_s5  ;;  %s837_s1 = sshll.u32 %s830_s16, 4  ;;  %s838_s1 = int_to_ptr.vmem [resolvable:$true] %s837_s1 }
  0x63   : > { %s796_s3 = sshll.u32 %s794_s23, 4  ;;  %s5792_s23 = scalar_lea.sflag [#allocation13], %s5101_s9  ;;  %s797_s3 = int_to_ptr.hbm [resolvable:$true] %s796_s3 }
  0x64   : > { %3947 = dma.hbm_to_vmem [thread:$0]  (!%p5118_p7), %s797_s3, 16, %s799_s19, %s5790_s13  }
  0x65   : > { %3953 = dma.hbm_to_vmem [thread:$0]  (!%p5118_p7), %s836_s6, 16, %s838_s1, %s5792_s23  }
  0x66   : > { %s884_s3 = scalar_lea.hbm %s5846_s11, %s4780_s5  ;;  %s881_s13 = scalar_lea.vmem [#allocation15], %s5123_s17 }
  0x67   : > { %s886_s19 = sshll.u32 %s884_s3, 4  ;;  %s888_s29 = sshll.u32 %s881_s13, 4  ;;  %s887_s19 = int_to_ptr.hbm [resolvable:$true] %s886_s19  ;;  %s889_s29 = int_to_ptr.vmem [resolvable:$true] %s888_s29 }
  0x68   : > { %3959 = dma.hbm_to_vmem [thread:$0]  (!%p5118_p7), %s887_s19, 16, %s889_s29, %s5791_s2  }
  0x69   : > { %s4794_s6 = smov [#allocation20]   ;;  %s680_s13 = sshll.u32 %s5848_s18, 4  ;;  %s681_s13 = int_to_ptr.hbm [resolvable:$true] %s680_s13 }
  0x6a   : > { %s656_s25 = sshll.u32 %s4794_s6, 4  ;;  %s4795_s3 = smov [#allocation23]   ;;  %s657_s25 = int_to_ptr.vmem [resolvable:$true] %s656_s25 }
  0x6b   : > { %3925 = dma.hbm_to_vmem [thread:$0]  (!%p4997_p5), %s655_s7, 16, %s657_s25, [#allocation19]  }
  0x6c   : > { %s682_s19 = sshll.u32 %s4795_s3, 4  ;;  %s697_s16 = sshll.u32 %s5760_s20, 4  ;;  %s683_s19 = int_to_ptr.vmem [resolvable:$true] %s682_s19  ;;  %s698_s16 = int_to_ptr.hbm [resolvable:$true] %s697_s16 }
  0x6d   : > { %s5849_s6 = smov 4   ;;  %s5850_s1 = smov 64  }
  0x6e   : > { %3931 = dma.hbm_to_vmem [thread:$0]  (!%p4997_p5), %s681_s13, 768, %s683_s19, [#allocation22], %s5850_s1, %s5850_s1, %s5849_s6  }
  0x6f   : > { %s699_s7 = sshll.u32 %s4796_s8, 4  ;;  %s5851_s25 = sshll.u32 %s4784_s24, 3  ;;  %s700_s7 = int_to_ptr.vmem [resolvable:$true] %s699_s7 }
  0x70   : > { %s5852_s23 = sld [smem:[#allocation51_spill]]  ;;  %s728_s15 = sshll.u32 %s720_s30, 4  ;;  %s729_s15 = int_to_ptr.vmem [resolvable:$true] %s728_s15 }
  0x71   : > { %3934 = dma.hbm_to_vmem [thread:$0]  (!%p4997_p5), %s698_s16, 384, %s700_s7, [#allocation25], %s5850_s1, %s5850_s1, %s5849_s6  }
  0x72   : > { %s5853_s13 = sand.u32 1, %s4768_s0   ;;  %s3690_s2 = sshll.u32 %s5123_s17, 4 }
  0x73   : > { %s717_s19 = scalar_lea.sflag [#allocation4], %s5853_s13  ;;  %s770_s7 = scalar_lea.vmem [#allocation8], %s3690_s2 }
  0x74   : > { %s778_s18 = sshll.u32 %s770_s7, 4  ;;  %s5856_s27 = sld [smem:[#allocation57_spill]]  ;;  %s779_s18 = int_to_ptr.vmem [resolvable:$true] %s778_s18 }
  0x75   : > { %s809_s13 = scalar_lea.vmem [#allocation11], %s3690_s2  ;;  %s5858_s10 = sld [smem:[#allocation61_spill]] }
  0x76   : > { %s724_s11 = scalar_lea.hbm %s5852_s23, %s5851_s25  ;;  %s3848_s23 = sshll.u32 %s4780_s5, 4 }
  0x77   : > { %s726_s29 = sshll.u32 %s724_s11, 4  ;;  %s5854_s25 = sld [smem:[#allocation55_spill]]  ;;  %s727_s29 = int_to_ptr.hbm [resolvable:$true] %s726_s29 }
  0x78   : > { %3938 = dma.hbm_to_vmem [thread:$0]  (!%p5096_p4), %s727_s29, 128, %s729_s15, %s717_s19  }
  0x79   : > { %s5855_s11 = scalar_lea.sflag [#allocation7], %s5101_s9  ;;  %s817_s19 = sshll.u32 %s809_s13, 4  ;;  %s818_s19 = int_to_ptr.vmem [resolvable:$true] %s817_s19 }
  0x7a   : > { %s814_s29 = scalar_lea.hbm %s5856_s27, %s3848_s23  ;;  %s3699_s15 = sshll.u32 %s5123_s17, 6 }
  0x7b   : > { %s815_s30 = sshll.u32 %s814_s29, 4  ;;  %s5860_s12 = sld [smem:[#allocation63_spill]]  ;;  %s816_s30 = int_to_ptr.hbm [resolvable:$true] %s815_s30 }
  0x7c   : > { %3950 = dma.hbm_to_vmem [thread:$0]  (!%p5118_p7), %s816_s30, 256, %s818_s19, %s5857_s26, %s5850_s1, %s5850_s1, %s5849_s6  }
  0x7d   : > { %s775_s3 = scalar_lea.hbm %s5854_s25, %s3848_s23  ;;  %s899_s19 = scalar_lea.vmem [#allocation17], %s3699_s15 }
  0x7e   : > { %s776_s16 = sshll.u32 %s775_s3, 4  ;;  %s5233_s17 = sand.u32 (!%p4989_p3), 1, %s4764_s4   ;;  %s777_s16 = int_to_ptr.hbm [resolvable:$true] %s776_s16 }
  0x7f   : > { %3944 = dma.hbm_to_vmem [thread:$0]  (!%p5118_p7), %s777_s16, 256, %s779_s18, %s5855_s11, %s5850_s1, %s5850_s1, %s5849_s6  }
  0x80   : > { %s865_s18 = scalar_lea.hbm %s5858_s10, %s3848_s23  ;;  %s860_s16 = scalar_lea.vmem [#allocation14], %s3690_s2 }
  0x81   : > { %s866_s3 = sshll.u32 %s865_s18, 4  ;;  %s868_s7 = sshll.u32 %s860_s16, 4  ;;  %s867_s3 = int_to_ptr.hbm [resolvable:$true] %s866_s3  ;;  %s869_s7 = int_to_ptr.vmem [resolvable:$true] %s868_s7 }
  0x82   : > { %s5859_s11 = scalar_lea.sflag [#allocation13], %s5101_s9  ;;  %s904_s30 = scalar_lea.hbm %s5860_s12, %s3851_s21 }
  0x83   : > { %3956 = dma.hbm_to_vmem [thread:$0]  (!%p5118_p7), %s867_s3, 256, %s869_s7, %s5859_s11, %s5850_s1, %s5850_s1, %s5849_s6  }
  0x84   : > { %s905_s13 = sshll.u32 %s904_s30, 4  ;;  %s907_s23 = sshll.u32 %s899_s19, 4  ;;  %s906_s13 = int_to_ptr.hbm [resolvable:$true] %s905_s13  ;;  %s908_s23 = int_to_ptr.vmem [resolvable:$true] %s907_s23 }
  0x85   : > { %s5861_s2 = scalar_lea.sflag [#allocation16], %s5101_s9  ;;  %925 = sbr.rel (%p4989_p3) target bundleno = 3562 (0xdea), region = 108 }
  0x86   : > { %3962 = dma.hbm_to_vmem [thread:$0]  (!%p5118_p7), %s906_s13, 1024, %s908_s23, %s5861_s2, %s5850_s1, %s5850_s1, %s5849_s6  }
  0x87   : > { %s5236_s26 = sshll.u32 (!%p4989_p3), %s5233_s17, 3  ;;  %s928_s8 = scalar_lea.sflag (!%p4989_p3), [#allocation4], %s5233_s17 }
  0x88   : > { %p5862_p5 = scmp.ne.s32.totalorder (!%p4989_p3), %s5828_s14, 0 }
  0x8a   : > { %4707 = dma.done.wait (%p5862_p5), %s928_s8, 128  }
  0x8b   : > { %4709 = vsyncadd (%p5862_p5), %s928_s8, 4294967168  ;;  %s5863_s9 = sld [smem:[#allocation43_spill]] }
  0x91   : > { %s937_s22 = sand.u32 1, %s5863_s9  }
  0x92   : > { %s938_s28 = scalar_lea.sflag [#allocation7], %s937_s22 }
  0x93   : > { %4711 = dma.done.wait (%p5862_p5), %s938_s28, 128  }
  0x94   : > { %4713 = vsyncadd (%p5862_p5), %s938_s28, 4294967168  ;;  %s5864_s1 = sld [smem:[#allocation37_spill]] }
  0x9a   : > { %s5251_s3 = sand.u32 1, %s5864_s1  }
  0x9b   : > { %s5254_s16 = sshll.u32 %s5251_s3, 4 }
  0x9c   : > { %4715 = dma.done.wait (%p5066_p10), %s938_s28, 256  }
  0x9d   : > { %4717 = vsyncadd (%p5066_p10), %s938_s28, 4294967040  ;;  %s958_s11 = scalar_lea.sflag [#allocation10], %s937_s22 }
  0x9e   : > { %4719 = dma.done.wait (%p5066_p10), %s958_s11, 272  }
  0x9f   : > { %4721 = vsyncadd (%p5066_p10), %s958_s11, 4294967024  ;;  %s977_s21 = scalar_lea.sflag [#allocation13], %s937_s22 }
  0xa0   : > { %4723 = dma.done.wait (%p5066_p10), %s977_s21, 272  }
  0xa1   : > { %4725 = vsyncadd (%p5066_p10), %s977_s21, 4294967024  ;;  %s996_s30 = scalar_lea.sflag [#allocation16], %s937_s22 }
  0xa2   : > { %4727 = dma.done.wait (%p5066_p10), %s996_s30, 1040  }
  0xa3   : > { %4729 = vsyncadd (%p5066_p10), %s996_s30, 4294966256  ;;  %s3708_s19 = sshll.u32 %s5251_s3, 6 }
  0xa4   : > { %s5279_s23 = scalar_lea.vmem [#allocation17], %s3708_s19 }
  0xa5   : > { %4731 = dma.done.wait (%p86_p1), [#allocation19], 272  }
  0xa6   : > { %4733 = vsyncadd (%p86_p1), [#allocation19], 4294967024 }
  0xa7   : > { %4735 = dma.done.wait (%p86_p1), [#allocation22], 784  }
  0xa8   : > { %4737 = vsyncadd (%p86_p1), [#allocation22], 4294966512 }
  0xa9   : > { %4739 = dma.done.wait (%p86_p1), [#allocation25], 384  }
  0xaa   : > { %4741 = vsyncadd (%p86_p1), [#allocation25], 4294966912  ;;  %s5866_s2 = sld [smem:[#allocation40_spill]]  ;;  %s1146_s12 = scalar_lea.vmem [#allocation26], %s5236_s26 }
  0xab   : > { %s5867_s1 = sld [smem:[#allocation53_spill]] }
  0xac   : > { %s5868_s30 = sld [smem:[#allocation54_spill]] }
  0xad   : > { %s5869_s13 = sld [smem:[#allocation59_spill]] }
  0xae   : > { %s5870_s15 = sld [smem:[#allocation60_spill]] }
  0xaf   : > { %s5871_s22 = sld [smem:[#allocation64_spill]] }
  0xb0   : > { %p1147_p3 = scmp.lt.s32.totalorder %s5866_s2, 1  ;;  %p3715_p1 = scmp.ne.s32.totalorder %s5866_s2, 0 }
  0xb2   : > { %s5295_s8 = scalar_select %p1147_p3, %s5866_s2, 1 }
  0xb3   : > { %1166 = sbr.rel (%p3715_p1) target bundleno = 186 (0xba), region = 168 }
  0xb4   : > { %s1149_s18 = scalar_lea.vmem %s5867_s1, %s5295_s8  ;;  %s1152_s9 = scalar_lea.vmem %s5868_s30, %s5295_s8 }
  0xb5   : > { %s1155_s29 = scalar_lea.vmem %s5869_s13, %s5295_s8  ;;  %s1158_s7 = scalar_lea.vmem %s5870_s15, %s5295_s8 }
  0xb6   : > { %s1161_s28 = scalar_lea.vmem %s5871_s22, %s5295_s8  ;;  %s5872_s1 = scalar_lea.vmem (!%p3715_p1), [#allocation3], %s5236_s26 }
  0xb8   : > { %v1167_v0 = vld [vmem:[%s5872_s1] sm:$0xff]  ;;  %vm1168_vm0 = vcmask 261120  }
  0xb9   : > { %1169 = vst.msk [vmem:[#allocation2] sm:$0xff] %vm1168_vm0, %v1167_v0 }
  0xba PF: > { %vm1173_vm1 = vcmask 261120   ;;  %v4797_v3 = vmov 32.0   ;;  %s5873_s10 = scalar_lea.vmem [#allocation8], %s5254_s16  ;;  %v4171_v26 = vld [vmem:[%s1149_s18] ss:$0 sm:$0xff]  ;;  %s5877_s11 = scalar_lea.vmem [#allocation9], %s5251_s3 }
  0xbb   : > { %4179 = vrcp.f32 %v4797_v3  ;;  %v3853_v15 = vld [vmem:[%s5873_s10 + $0x8] sm:$0xff]  ;;  %s5874_s25 = smov %s5873_s10  ;;  %s4798_s21 = smov 112   ;;  %v4802_v45 = vmov 1983009808   ;;  %vm1264_vm6 = vcmask 1047556   ;;  %vm1933_vm7 = vcmask 1043456  }
  0xbc   : > { %1241 = vmatpush.bf16.msra.mxu0 %v3853_v15  ;;  %v3852_v16 = vld [vmem:[%s5874_s25] sm:$0xff]  ;;  %s4799_s18 = smov 120   ;;  %s4800_s30 = smov 104   ;;  %v1269_v46 = vunpack.c.l.s4 %v4802_v45  ;;  %v4803_v53 = vmov 1934713408   ;;  %vm1929_vm8 = vcmask 64512  }
  0xbd   : > { %v4172_v29 = vld [vmem:[%s1152_s9] ss:$0 sm:$0xff]  ;;  %s4801_s9 = smov 96   ;;  %v1293_v54 = vunpack.c.l.s4 %v4803_v53  ;;  %s4804_s19 = smov 64   ;;  %vm2788_vm10 = vcmask 130048   ;;  %vm2790_vm11 = vcmask 195584  }
  0xbe   : > { %v4173_v33 = vld [vmem:[%s5877_s11] ss:$0 sm:$0xff]  ;;  %v5365_v52 = vunpack.c.0.s8 %v1269_v46  ;;  %s4805_s22 = smov 24   ;;  %s4806_s1 = smov 16  }
  0xbf   : > { %s4807_s10 = smov 8   ;;  %s5878_s25 = scalar_lea.vmem [#allocation11], %s5254_s16 }
  0xc0   : > { %v1170_v1 = vld [vmem:[#allocation2] sm:$0xff]  ;;  %1242 = vmatpush.bf16.msra.mxu0 %v3852_v16  ;;  %s5879_s6 = smov %s5878_s25  ;;  %s5880_s15 = scalar_lea.vmem [#allocation12], %s5251_s3 }
  0xc1   : > { %v1174_v2 = vsel %vm1173_vm1, %v1170_v1, 0.0  ;;  %v4180_v4 = vpop.eup %4179  ;;  %s5881_s14 = scalar_lea.vmem [#allocation14], %s5254_s16 }
  0xc2   : > { %1175 = vadd.xlane.f32.xlu0 %v1174_v2  ;;  %v1178_v5 = vmul.f32 32.0, %v4180_v4  ;;  %vm1182_vm2 = vweird.f32 %v4180_v4  ;;  %v5374_v2 = vunpack.c.0.s8 %v1293_v54  ;;  %s5882_s27 = smov %s5881_s14 }
  0xc4   : > { %v1179_v6 = vsub.f32 1.0, %v1178_v5 }
  0xc6   : > { %v1180_v7 = vmul.f32 %v4180_v4, %v1179_v6 }
  0xc8   : > { %v1181_v8 = vadd.f32 %v4180_v4, %v1180_v7 }
  0xca   : > { %v5322_v9 = vsel %vm1182_vm2, %v4180_v4, %v1181_v8 }
 0x135   : > { %v1176_v10 = vpop.xlane.xlu0 %1175 }
 0x136   : > { %v1184_v11 = vmul.f32 %v5322_v9, %v1176_v10 }
 0x138   : > { %v1185_v12 = vsub.f32 %v1170_v1, %v1184_v11 }
 0x13a   : > { %v1186_v13 = vmul.f32 %v1185_v12, %v1185_v12 }
 0x13c   : > { %v1187_v14 = vsel %vm1173_vm1, %v1186_v13, 0.0 }
 0x13d   : > { %1188 = vadd.xlane.f32.xlu0 %v1187_v14 }
 0x1b0   : > { %v1189_v17 = vpop.xlane.xlu0 %1188 }
 0x1b1   : > { %v1190_v18 = vmul.f32 %v1189_v17, %v5322_v9 }
 0x1b3   : > { %v1191_v19 = vadd.f32 1e-06, %v1190_v18 }
 0x1b5   : > { %4181 = vrsqrt.f32 %v1191_v19  ;;  %vm1198_vm4 = vweird.f32 %v1191_v19 }
 0x1bb   : > { %v4182_v20 = vpop.eup %4181 }
 0x1bc   : > { %v1193_v21 = vmul.f32 %v4182_v20, %v1191_v19  ;;  %vm1199_vm3 = vweird.f32 %v4182_v20 }
 0x1bd   : > { %vm1200_vm5 = vmor %vm1198_vm4, %vm1199_vm3 }
 0x1be   : > { %v1194_v22 = vmul.f32 %v4182_v20, %v1193_v21 }
 0x1c0   : > { %v1195_v23 = vmul.f32 0.5, %v1194_v22 }
 0x1c2   : > { %v1196_v24 = vsub.f32 1.5, %v1195_v23 }
 0x1c4   : > { %v1197_v25 = vmul.f32 %v4182_v20, %v1196_v24 }
 0x1c6   : > { %v1201_v27 = vsel %vm1200_vm5, %v4182_v20, %v1197_v25 }
 0x1c7   : > { %v1202_v28 = vmul.f32 %v1201_v27, %v1185_v12 }
 0x1c9   : > { %v1206_v30 = vmul.f32 %v4171_v26, %v1202_v28 }
 0x1cb   : > { %v1210_v31 = vadd.f32 %v4172_v29, %v1206_v30 }
 0x1cd   : > { %v1215_v32 = vpack.c.bf16 %v1210_v31, %v1210_v31 }
 0x1cf   : > { %3724 = vmatmul.msk.bf16.vlgmr.msra.gmra.mxu0 %vm1173_vm1, %v1215_v32 }
 0x24c   : > { %v1244_v34 = vpop.f32.mrf.mxu0 }
 0x24d   : > { %v5344_v35 = vadd.f32 %v4173_v33, %v1244_v34 }
 0x24f   : > { %1257 = vrot.lane.b32.xlu2 %v5344_v35, %s4798_s21  ;;  %1254 = vrot.lane.b32.xlu1 %v5344_v35, %s4799_s18 }
 0x254   : > { %v1246_v36 = vpop.f32.mrf.mxu0 }
 0x257   : > { %1260 = vrot.lane.b32.xlu1 %v5344_v35, %s4800_s30  ;;  %s5887_s30 = sld [smem:[#allocation40_spill]] }
 0x25d   : > { %p3783_p9 = scmp.ne.s32.totalorder %s5887_s30, 1 }
 0x25e   : > { %s5891_s16 = sld [smem:[#allocation71_spill]] (!%p3783_p9) }
 0x2a9   : > { %v5356_v39 = vpop.permute.xlu2 %1257 }
 0x2c1   : > { %v5349_v37 = vpop.permute.xlu1 %1254 }
 0x2c2   : > { %v5353_v38 = vpack.i.bf16 %v5344_v35, %v5349_v37 }
 0x2c4   : > { %4090 = vrot.lane.b32.xlu2 %v5353_v38, %s4801_s9 }
 0x2c9   : > { %v5358_v40 = vpop.permute.xlu1 %1260 }
 0x2ca   : > { %v5362_v41 = vpack.i.bf16 %v5356_v39, %v5358_v40 }
 0x2cc   : > { %4095 = vrot.lane.b32.xlu0 %v5362_v41, %s4801_s9 }
 0x31e   : > { %v4091_v42 = vpop.permute.xlu2 %4090 }
 0x31f   : > { %v4093_v43 = vunpack.i.h.bf16 %v4091_v42  ;;  %v4092_v44 = vunpack.i.l.bf16 %v4091_v42 }
 0x321   : > { %v1342_v48 = vrot.slane %v4093_v43, 4  ;;  %v1354_v49 = vrot.slane %v4092_v44, 4 }
 0x33e   : > { %v4096_v47 = vpop.permute.xlu0 %4095 }
 0x33f   : > { %v4098_v50 = vunpack.i.h.bf16 %v4096_v47  ;;  %v4097_v51 = vunpack.i.l.bf16 %v4096_v47 }
 0x341   : > { %v1340_v55 = vrot.slane %v4098_v50, 4  ;;  %v1343_v56 = vsel %vm1264_vm6, %v4098_v50, %v1342_v48  ;;  %v1352_v57 = vrot.slane %v4097_v51, 4  ;;  %v1355_v58 = vsel %vm1264_vm6, %v4097_v51, %v1354_v49 }
 0x342   : > { %v1351_v59 = vperm.slane %v1343_v56, %v5365_v52  ;;  %v1363_v60 = vperm.slane %v1355_v58, %v5365_v52 }
 0x343   : > { %v1341_v61 = vsel %vm1264_vm6, %v1340_v55, %v4093_v43  ;;  %v1353_v62 = vsel %vm1264_vm6, %v1352_v57, %v4092_v44 }
 0x344   : > { %v1378_v63 = vrot.slane %v1351_v59, 4  ;;  %v1359_v0 = vperm.slane %v1353_v62, %v5365_v52  ;;  %v1376_v1 = vrot.slane %v1363_v60, 4  ;;  %v1347_v3 = vperm.slane %v1341_v61, %v5365_v52 }
 0x346   : > { %v1364_v4 = vrot.slane %v1359_v0, 4  ;;  %v1379_v5 = vsel %vm1264_vm6, %v1363_v60, %v1378_v63  ;;  %v1377_v6 = vsel %vm1264_vm6, %v1376_v1, %v1351_v59  ;;  %v1366_v20 = vrot.slane %v1347_v3, 4 }
 0x347   : > { %v1387_v7 = vperm.slane %v1379_v5, %v5374_v2  ;;  %v1383_v8 = vperm.slane %v1377_v6, %v5374_v2 }
 0x348   : > { %v1365_v10 = vsel %vm1264_vm6, %v1364_v4, %v1347_v3  ;;  %v1367_v25 = vsel %vm1264_vm6, %v1359_v0, %v1366_v20 }
 0x349   : > { %v1394_v11 = vrot.slane %v1387_v7, 4  ;;  %v1392_v12 = vrot.slane %v1383_v8, 4  ;;  %v1371_v13 = vperm.slane %v1365_v10, %v5374_v2  ;;  %v1402_v16 = vpack.c.bf16 %v1387_v7, %v1387_v7 }
 0x34a   : > { %v1400_v21 = vpack.c.bf16 %v1383_v8, %v1383_v8  ;;  %v1375_v26 = vperm.slane %v1367_v25, %v5374_v2 }
 0x34b   : > { %v1395_v14 = vsel %vm1264_vm6, 0.0, %v1394_v11  ;;  %v1393_v15 = vsel %vm1264_vm6, 0.0, %v1392_v12  ;;  %v1388_v19 = vrot.slane %v1371_v13, 4  ;;  %v1396_v23 = vpack.c.bf16 %v1371_v13, %v1371_v13 }
 0x34c   : > { %v1403_v17 = vpack.c.bf16 %v1395_v14, %v1395_v14  ;;  %v1401_v18 = vpack.c.bf16 %v1393_v15, %v1393_v15  ;;  %v1390_v27 = vrot.slane %v1375_v26, 4  ;;  %v1398_v29 = vpack.c.bf16 %v1375_v26, %v1375_v26 }
 0x34d   : > { %v1389_v22 = vsel %vm1264_vm6, 0.0, %v1388_v19 }
 0x34e   : > { %4102 = vxpose.binary.xlu0.c.b16.start.end [1/2] (short) (narrow) %v1403_v17, %v1402_v16, 16  ;;  %v1397_v24 = vpack.c.bf16 %v1389_v22, %v1389_v22  ;;  %v1391_v28 = vsel %vm1264_vm6, 0.0, %v1390_v27 }
 0x34f   : > { %4099 = vxpose.binary.xlu1.c.b16.start.end [1/2] (short) (narrow) %v1401_v18, %v1400_v21, 16  ;;  %v1399_v30 = vpack.c.bf16 %v1391_v28, %v1391_v28 }
 0x350   : > { %4105 = vxpose.binary.xlu2.c.b16.start.end [1/2] (short) (narrow) %v1397_v24, %v1396_v23, 16 }
 0x360   : > { %4108 = vxpose.binary.xlu2.c.b16.start.end [1/2] (short) (narrow) %v1399_v30, %v1398_v29, 16 }
 0x3f1   : > { %v4106_v31 = vpop.trf.xlu2 }
 0x3f9   : > { %v4107_v32 = vpop.trf.xlu2 }
 0x3fa   : > { %v4103_v33 = vpop.trf.xlu0 }
 0x3fb   : > { %v4100_v34 = vpop.trf.xlu1  ;;  %v1667_v43 = vrot.slane %v4103_v33, 4  ;;  %v1263_v33 = vrot.slane %v5356_v39, 4 }
 0x3fc   : > { %v1661_v36 = vrot.slane %v4100_v34, 4 }
 0x3fe   : > { %v1662_v42 = vsel %vm1264_vm6, %v1661_v36, %v4106_v31  ;;  %v1278_v36 = vrot.slane %v5349_v37, 4 }
 0x3ff   : > { %v1666_v44 = vperm.slane %v1662_v42, %v5365_v52  ;;  %v1276_v42 = vrot.slane %v5358_v40, 4 }
 0x401   : > { %v4109_v45 = vpop.trf.xlu2  ;;  %v1675_v48 = vrot.slane %v1666_v44, 4 }
 0x402   : > { %v1668_v46 = vsel %vm1264_vm6, %v1667_v43, %v4109_v45  ;;  %v4104_v51 = vpop.trf.xlu0  ;;  %v1279_v43 = vsel %vm1264_vm6, %v5358_v40, %v1278_v36  ;;  %v1277_v45 = vsel %vm1264_vm6, %v1276_v42, %v5349_v37 }
 0x403   : > { %v4101_v47 = vpop.trf.xlu1  ;;  %v1672_v49 = vperm.slane %v1668_v46, %v5365_v52  ;;  %v1695_v56 = vrot.slane %v4104_v51, 4 }
 0x404   : > { %v1689_v50 = vrot.slane %v4101_v47, 4  ;;  %v1283_v47 = vperm.slane %v1277_v45, %v5365_v52 }
 0x405   : > { %v1673_v53 = vrot.slane %v1672_v49, 4  ;;  %v1676_v54 = vsel %vm1264_vm6, %v1672_v49, %v1675_v48 }
 0x406   : > { %v1690_v55 = vsel %vm1264_vm6, %v1689_v50, %v4107_v32  ;;  %v1684_v59 = vperm.slane %v1676_v54, %v5374_v2  ;;  %v1266_v32 = vrot.slane %v5344_v35, 4  ;;  %v1288_v51 = vrot.slane %v1283_v47, 4 }
 0x407   : > { %v1674_v57 = vsel %vm1264_vm6, %v1673_v53, %v1666_v44  ;;  %v1694_v58 = vperm.slane %v1690_v55, %v5365_v52 }
 0x408   : > { %v1680_v60 = vperm.slane %v1674_v57, %v5374_v2  ;;  %v1687_v1 = vrot.slane %v1684_v59, 4  ;;  %v1737_v8 = vshrl.u32 %v1684_v59, 16  ;;  %v1267_v34 = vsel %vm1264_vm6, %v5356_v39, %v1266_v32 }
 0x409   : > { %v4110_v61 = vpop.trf.xlu2  ;;  %v1703_v63 = vrot.slane %v1694_v58, 4  ;;  %v1275_v44 = vperm.slane %v1267_v34, %v5365_v52 }
 0x40a   : > { %v1696_v62 = vsel %vm1264_vm6, %v1695_v56, %v4110_v61  ;;  %v1685_v5 = vrot.slane %v1680_v60, 4  ;;  %v1688_v12 = vsel %vm1264_vm6, 0, %v1687_v1  ;;  %v1721_v29 = vshrl.u32 %v1680_v60, 16 }
 0x40b   : > { %v1700_v0 = vperm.slane %v1696_v62, %v5365_v52  ;;  %v1745_v19 = vshrl.u32 %v1688_v12, 16  ;;  %v1302_v39 = vrot.slane %v1275_v44, 4 }
 0x40c   : > { %v1686_v14 = vsel %vm1264_vm6, 0, %v1685_v5 }
 0x40d   : > { %v1701_v3 = vrot.slane %v1700_v0, 4  ;;  %v1704_v4 = vsel %vm1264_vm6, %v1700_v0, %v1703_v63  ;;  %v1729_v24 = vshrl.u32 %v1686_v14, 16 }
 0x40e   : > { %v1712_v6 = vperm.slane %v1704_v4, %v5374_v2 }
 0x40f   : > { %v1702_v7 = vsel %vm1264_vm6, %v1701_v3, %v1694_v58 }
 0x410   : > { %v1708_v10 = vperm.slane %v1702_v7, %v5374_v2  ;;  %v1738_v11 = vshrl.u32 %v1712_v6, 16  ;;  %v1715_v13 = vrot.slane %v1712_v6, 4  ;;  %v1735_v15 = vpack.i.b16 %v1712_v6, %v1684_v59 }
 0x412   : > { %v1739_v16 = vpack.i.b16 %v1738_v11, %v1737_v8  ;;  %v1716_v17 = vsel %vm1264_vm6, 0, %v1715_v13  ;;  %v1713_v18 = vrot.slane %v1708_v10, 4  ;;  %v1722_v28 = vshrl.u32 %v1708_v10, 16 }
 0x413   : > { %v1746_v20 = vshrl.u32 %v1716_v17, 16  ;;  %v1743_v22 = vpack.i.b16 %v1716_v17, %v1688_v12  ;;  %v1719_v30 = vpack.i.b16 %v1708_v10, %v1680_v60 }
 0x414   : > { %4111 = vxpose.binary.xlu2.c.b16.start.end [1/2] (short) (narrow) %v1739_v16, %v1735_v15, 16  ;;  %v1714_v21 = vsel %vm1264_vm6, 0, %v1713_v18  ;;  %v1723_v31 = vpack.i.b16 %v1722_v28, %v1721_v29 }
 0x415   : > { %v1747_v23 = vpack.i.b16 %v1746_v20, %v1745_v19  ;;  %v1730_v25 = vshrl.u32 %v1714_v21, 16  ;;  %v1727_v26 = vpack.i.b16 %v1714_v21, %v1686_v14 }
 0x417   : > { %4117 = vxpose.binary.xlu1.c.b16.start.end [1/2] (short) (narrow) %v1747_v23, %v1743_v22, 16  ;;  %v1731_v27 = vpack.i.b16 %v1730_v25, %v1729_v24 }
 0x419   : > { %4114 = vxpose.binary.xlu0.c.b16.start.end [1/2] (short) (narrow) %v1731_v27, %v1727_v26, 16 }
 0x427   : > { %4120 = vxpose.binary.xlu1.c.b16.start.end [1/2] (short) (narrow) %v1723_v31, %v1719_v30, 16 }
 0x47d   : > { %4129 = vrot.lane.b32.xlu2 %v5362_v41, %s4804_s19  ;;  %v1265_v41 = vsel %vm1264_vm6, %v1263_v33, %v5344_v35 }
 0x47e   : > { %v1271_v46 = vperm.slane %v1265_v41, %v5365_v52 }
 0x480   : > { %v1290_v50 = vrot.slane %v1271_v46, 4  ;;  %v1289_v56 = vsel %vm1264_vm6, %v1288_v51, %v1271_v46 }
 0x481   : > { %v1295_v58 = vperm.slane %v1289_v56, %v5374_v2 }
 0x482   : > { %v1291_v53 = vsel %vm1264_vm6, %v1283_v47, %v1290_v50 }
 0x483   : > { %v1299_v54 = vperm.slane %v1291_v53, %v5374_v2  ;;  %v1312_v63 = vrot.slane %v1295_v58, 4  ;;  %v1320_v23 = vpack.c.bf16 %v1295_v58, %v1295_v58 }
 0x485   : > { %v1314_v59 = vrot.slane %v1299_v54, 4  ;;  %v1313_v11 = vsel %vm1264_vm6, 0.0, %v1312_v63  ;;  %v1322_v12 = vpack.c.bf16 %v1299_v54, %v1299_v54 }
 0x486   : > { %v1321_v18 = vpack.c.bf16 %v1313_v11, %v1313_v11 }
 0x487   : > { %4124 = vrot.lane.b32.xlu0 %v5353_v38, %s4804_s19  ;;  %v1287_v38 = vperm.slane %v1279_v43, %v5365_v52  ;;  %v1315_v1 = vsel %vm1264_vm6, 0.0, %v1314_v59 }
 0x488   : > { %v1323_v10 = vpack.c.bf16 %v1315_v1, %v1315_v1 }
 0x489   : > { %v1300_v48 = vrot.slane %v1287_v38, 4  ;;  %v1303_v49 = vsel %vm1264_vm6, %v1287_v38, %v1302_v39 }
 0x48a   : > { %v1311_v40 = vperm.slane %v1303_v49, %v5374_v2 }
 0x48b   : > { %v1301_v35 = vsel %vm1264_vm6, %v1300_v48, %v1275_v44 }
 0x48c   : > { %v1307_v37 = vperm.slane %v1301_v35, %v5374_v2  ;;  %v1318_v55 = vrot.slane %v1311_v40, 4  ;;  %v1326_v3 = vpack.c.bf16 %v1311_v40, %v1311_v40 }
 0x48e   : > { %v1316_v60 = vrot.slane %v1307_v37, 4  ;;  %v1319_v61 = vsel %vm1264_vm6, 0.0, %v1318_v55  ;;  %v1324_v13 = vpack.c.bf16 %v1307_v37, %v1307_v37  ;;  %v1487_v14 = vrot.slane %v1326_v3, 4 }
 0x48f   : > { %v1327_v62 = vpack.c.bf16 %v1319_v61, %v1319_v61 }
 0x490   : > { %v1317_v0 = vsel %vm1264_vm6, 0.0, %v1316_v60  ;;  %v1480_v21 = vrot.slane %v1324_v13, 4  ;;  %v1488_v24 = vsel %vm1264_vm6, %v1487_v14, %v1322_v12 }
 0x491   : > { %v1325_v6 = vpack.c.bf16 %v1317_v0, %v1317_v0  ;;  %v1507_v7 = vrot.slane %v1327_v62, 4  ;;  %v1492_v31 = vperm.slane %v1488_v24, %v5365_v52 }
 0x492   : > { %v1482_v34 = vsel %vm1264_vm6, %v1480_v21, %v1320_v23 }
 0x493   : > { %v1501_v17 = vrot.slane %v1325_v6, 4  ;;  %v1508_v19 = vsel %vm1264_vm6, %v1507_v7, %v1323_v10  ;;  %v1486_v45 = vperm.slane %v1482_v34, %v5365_v52  ;;  %v1493_v46 = vrot.slane %v1492_v31, 4 }
 0x494   : > { %v1512_v26 = vperm.slane %v1508_v19, %v5365_v52 }
 0x495   : > { %v1502_v29 = vsel %vm1264_vm6, %v1501_v17, %v1321_v18  ;;  %v1494_v40 = vsel %vm1264_vm6, %v1493_v46, %v1486_v45 }
 0x496   : > { %v1506_v42 = vperm.slane %v1502_v29, %v5365_v52  ;;  %v1513_v43 = vrot.slane %v1512_v26, 4  ;;  %v1498_v55 = vperm.slane %v1494_v40, %v5374_v2 }
 0x498   : > { %v1514_v48 = vsel %vm1264_vm6, %v1513_v43, %v1506_v42  ;;  %v1499_v63 = vrot.slane %v1498_v55, 4  ;;  %v1524_v11 = vshrl.u32 %v1498_v55, 16 }
 0x499   : > { %v1518_v35 = vperm.slane %v1514_v48, %v5374_v2 }
 0x49b   : > { %v1519_v58 = vrot.slane %v1518_v35, 4  ;;  %v1523_v10 = vpack.i.b16 %v1518_v35, %v1498_v55 }
 0x49d   : > { %v1520_v12 = vsel %vm1264_vm6, 0, %v1519_v58 }
 0x49e   : > { %v1531_v19 = vshrl.u32 %v1520_v12, 16 }
 0x4b5   : > { %v4112_v15 = vpop.trf.xlu2 }
 0x4b6   : > { %v1877_v20 = vrot.slane %v4112_v15, 4 }
 0x4bd   : > { %v4113_v44 = vpop.trf.xlu2 }
 0x4be   : > { %v1897_v38 = vrot.slane %v4113_v44, 4 }
 0x4c3   : > { %v4118_v57 = vpop.trf.xlu1 }
 0x4c4   : > { %v1883_v5 = vrot.slane %v4118_v57, 4 }
 0x4c5   : > { %v4115_v4 = vpop.trf.xlu0 }
 0x4c6   : > { %v1884_v16 = vsel %vm1264_vm6, %v1883_v5, %v4115_v4  ;;  %v1525_v4 = vshrl.u32 %v1518_v35, 16 }
 0x4c7   : > { %v1888_v22 = vperm.slane %v1884_v16, %v5365_v52  ;;  %v1500_v16 = vsel %vm1264_vm6, 0, %v1499_v63 }
 0x4c8   : > { %v1526_v15 = vpack.i.b16 %v1525_v4, %v1524_v11  ;;  %v1529_v18 = vpack.i.b16 %v1520_v12, %v1500_v16  ;;  %v1530_v21 = vshrl.u32 %v1500_v16, 16 }
 0x4c9   : > { %v1889_v32 = vrot.slane %v1888_v22, 4 }
 0x4ca   : > { %v1532_v24 = vpack.i.b16 %v1531_v19, %v1530_v21 }
 0x4cb   : > { %v4119_v8 = vpop.trf.xlu1 }
 0x4cc   : > { %v1903_v25 = vrot.slane %v4119_v8, 4 }
 0x4cd   : > { %v4116_v27 = vpop.trf.xlu0 }
 0x4ce   : > { %v1904_v36 = vsel %vm1264_vm6, %v1903_v25, %v4116_v27 }
 0x4cf   : > { %v1908_v39 = vperm.slane %v1904_v36, %v5365_v52 }
 0x4d1   : > { %v1909_v51 = vrot.slane %v1908_v39, 4 }
 0x4d3   : > { %v4121_v28 = vpop.trf.xlu1 }
 0x4d4   : > { %v1878_v30 = vsel %vm1264_vm6, %v1877_v20, %v4121_v28 }
 0x4d5   : > { %v1882_v33 = vperm.slane %v1878_v30, %v5365_v52 }
 0x4d7   : > { %v1890_v41 = vsel %vm1264_vm6, %v1889_v32, %v1882_v33  ;;  %v4130_v20 = vpop.permute.xlu2 %4129 }
 0x4d8   : > { %v1894_v47 = vperm.slane %v1890_v41, %v5374_v2  ;;  %v4132_v22 = vunpack.i.h.bf16 %v4130_v20  ;;  %v4131_v23 = vunpack.i.l.bf16 %v4130_v20 }
 0x4da   : > { %v1895_v54 = vrot.slane %v1894_v47, 4  ;;  %v1920_v57 = vshrl.u32 %v1894_v47, 16  ;;  %v1416_v26 = vrot.slane %v4132_v22, 4  ;;  %v1428_v27 = vrot.slane %v4131_v23, 4 }
 0x4db   : > { %v4122_v49 = vpop.trf.xlu1 }
 0x4dc   : > { %v1898_v50 = vsel %vm1264_vm6, %v1897_v38, %v4122_v49  ;;  %v1896_v61 = vsel %vm1264_vm6, 0, %v1895_v54 }
 0x4dd   : > { %v1902_v53 = vperm.slane %v1898_v50, %v5365_v52  ;;  %v1926_v6 = vshrl.u32 %v1896_v61, 16 }
 0x4df   : > { %v1910_v37 = vsel %vm1264_vm6, %v1909_v51, %v1902_v53 }
 0x4e0   : > { %v1914_v56 = vperm.slane %v1910_v37, %v5374_v2 }
 0x4e2   : > { %v1919_v59 = vpack.i.b16 %v1914_v56, %v1894_v47  ;;  %v1921_v60 = vshrl.u32 %v1914_v56, 16  ;;  %v1915_v62 = vrot.slane %v1914_v56, 4 }
 0x4e4   : > { %v1935_v0 = vsel %vm1933_vm7, %v1919_v59, 0  ;;  %v1922_v1 = vpack.i.b16 %v1921_v60, %v1920_v57  ;;  %v1916_v3 = vsel %vm1264_vm6, 0, %v1915_v62  ;;  %v1248_v59 = vlaneseq }
 0x4e5   : > { %1944 = vmatpush.bf16.msra.mxu1 %v1935_v0  ;;  %v1925_v5 = vpack.i.b16 %v1916_v3, %v1896_v61  ;;  %v1927_v7 = vshrl.u32 %v1916_v3, 16 }
 0x4e6   : > { %v1954_v8 = vsel %vm1933_vm7, %v1922_v1, 0  ;;  %v1249_v60 = vshrl.u32 %v1248_v59, 7  ;;  %v1251_v61 = vand.u32 127, %v1248_v59 }
 0x4e7   : > { %1963 = vmatpush.bf16.msra.mxu2 %v1954_v8  ;;  %v1973_v13 = vsel %vm1933_vm7, %v1925_v5, 0  ;;  %v1928_v14 = vpack.i.b16 %v1927_v7, %v1926_v6 }
 0x4e8   : > { %3725 = vmatmul.msk.bf16.vlgmr.msra.gmra.mxu1 %vm1929_vm8, %v1523_v10  ;;  %1982 = vmatpush.bf16.msra.mxu3 %v1973_v13  ;;  %vm1252_vm9 = vcmp.ge.s32.totalorder %v1249_v60, %v1251_v61 }
 0x4e9   : > { %v1992_v17 = vsel %vm1933_vm7, %v1928_v14, 0 }
 0x4ea   : > { %3726 = vmatmul.msk.bf16.vlgmr.msra.gmra.mxu2 %vm1929_vm8, %v1526_v15  ;;  %2001 = vmatpush.bf16.msrb.mxu1 %v1992_v17 }
 0x4eb   : > { %3727 = vmatmul.msk.bf16.vlgmr.msra.gmra.mxu3 %vm1929_vm8, %v1529_v18 }
 0x4f8   : > { %3728 = vmatmul.msk.bf16.vlgmr.msrb.gmra.mxu1 %vm1929_vm8, %v1532_v24 }
 0x4f9   : > { %v4125_v25 = vpop.permute.xlu0 %4124 }
 0x4fa   : > { %v4127_v28 = vunpack.i.h.bf16 %v4125_v25  ;;  %v4126_v29 = vunpack.i.l.bf16 %v4125_v25 }
 0x4fc   : > { %v1417_v30 = vsel %vm1264_vm6, %v1416_v26, %v4127_v28  ;;  %v1418_v31 = vrot.slane %v4127_v28, 4  ;;  %v1429_v32 = vsel %vm1264_vm6, %v1428_v27, %v4126_v29  ;;  %v1430_v33 = vrot.slane %v4126_v29, 4 }
 0x4fd   : > { %v1435_v34 = vperm.slane %v1429_v32, %v5365_v52  ;;  %v1423_v43 = vperm.slane %v1417_v30, %v5365_v52 }
 0x4fe   : > { %v1419_v36 = vsel %vm1264_vm6, %v4132_v22, %v1418_v31  ;;  %v1431_v42 = vsel %vm1264_vm6, %v4131_v23, %v1430_v33 }
 0x4ff   : > { %v1427_v44 = vperm.slane %v1419_v36, %v5365_v52  ;;  %v1439_v41 = vperm.slane %v1431_v42, %v5365_v52  ;;  %v1440_v38 = vrot.slane %v1435_v34, 4  ;;  %v1442_v40 = vrot.slane %v1423_v43, 4 }
 0x501   : > { %v1454_v45 = vrot.slane %v1427_v44, 4  ;;  %v1452_v46 = vrot.slane %v1439_v41, 4  ;;  %v1441_v39 = vsel %vm1264_vm6, %v1440_v38, %v1423_v43  ;;  %v1443_v54 = vsel %vm1264_vm6, %v1435_v34, %v1442_v40 }
 0x502   : > { %v1451_v37 = vperm.slane %v1443_v54, %v5374_v2  ;;  %v1447_v20 = vperm.slane %v1441_v39, %v5374_v2 }
 0x503   : > { %v1453_v47 = vsel %vm1264_vm6, %v1452_v46, %v1427_v44  ;;  %v1455_v48 = vsel %vm1264_vm6, %v1439_v41, %v1454_v45 }
 0x504   : > { %v1459_v49 = vperm.slane %v1453_v47, %v5374_v2  ;;  %v1466_v55 = vrot.slane %v1451_v37, 4  ;;  %v1474_v57 = vpack.c.bf16 %v1451_v37, %v1451_v37  ;;  %v1464_v21 = vrot.slane %v1447_v20, 4 }
 0x505   : > { %v1463_v23 = vperm.slane %v1455_v48, %v5374_v2  ;;  %v1472_v24 = vpack.c.bf16 %v1447_v20, %v1447_v20 }
 0x506   : > { %v1468_v50 = vrot.slane %v1459_v49, 4  ;;  %v1476_v53 = vpack.c.bf16 %v1459_v49, %v1459_v49  ;;  %v1467_v56 = vsel %vm1264_vm6, 0.0, %v1466_v55  ;;  %v1465_v22 = vsel %vm1264_vm6, 0.0, %v1464_v21 }
 0x507   : > { %v1475_v58 = vpack.c.bf16 %v1467_v56, %v1467_v56  ;;  %v1473_v25 = vpack.c.bf16 %v1465_v22, %v1465_v22  ;;  %v1470_v26 = vrot.slane %v1463_v23, 4  ;;  %v1478_v28 = vpack.c.bf16 %v1463_v23, %v1463_v23 }
 0x508   : > { %v1469_v51 = vsel %vm1264_vm6, 0.0, %v1468_v50 }
 0x509   : > { %v1477_v35 = vpack.c.bf16 %v1469_v51, %v1469_v51  ;;  %v1471_v27 = vsel %vm1264_vm6, 0.0, %v1470_v26 }
 0x50a   : > { %v1479_v29 = vpack.c.bf16 %v1471_v27, %v1471_v27 }
 0x50b   : > { %4133 = vxpose.binary.xlu1.c.b16.start.end [1/2] (short) (narrow) %v1477_v35, %v1476_v53, 16 }
 0x51b   : > { %4142 = vxpose.binary.xlu1.c.b16.start.end [1/2] (short) (narrow) %v1475_v58, %v1474_v57, 16 }
 0x565   : > { %v1946_v62 = vpop.f32.mrf.mxu1 }
 0x566   : > { %v2007_v63 = vmul.f32 0.35355338, %v1946_v62 }
 0x568   : > { %v2013_v0 = vsel %vm1252_vm9, %v2007_v63, -1e+09 }
 0x569   : > { %v2017_v1 = vsel %vm1929_vm8, %v2013_v0, -inf }
 0x56a   : > { %2018 = vmax.xlane.f32.xlu2 %v2017_v1 }
 0x56d   : > { %v1948_v3 = vpop.f32.mrf.mxu1  ;;  %v1965_v4 = vpop.f32.mrf.mxu2 }
 0x56e   : > { %v2008_v5 = vmul.f32 0.35355338, %v1965_v4  ;;  %v1984_v6 = vpop.f32.mrf.mxu3 }
 0x56f   : > { %v2009_v10 = vmul.f32 0.35355338, %v1984_v6 }
 0x570   : > { %v2014_v7 = vsel %vm1252_vm9, %v2008_v5, -1e+09 }
 0x571   : > { %v2020_v8 = vsel %vm1929_vm8, %v2014_v7, -inf  ;;  %v2015_v14 = vsel %vm1252_vm9, %v2009_v10, -1e+09 }
 0x572   : > { %2021 = vmax.xlane.f32.xlu0 %v2020_v8  ;;  %v2023_v15 = vsel %vm1929_vm8, %v2015_v14, -inf }
 0x575   : > { %v1967_v11 = vpop.f32.mrf.mxu2  ;;  %v2003_v12 = vpop.f32.mrf.mxu1 }
 0x576   : > { %v1986_v13 = vpop.f32.mrf.mxu3  ;;  %v2010_v16 = vmul.f32 0.35355338, %v2003_v12 }
 0x578   : > { %v2016_v18 = vsel %vm1252_vm9, %v2010_v16, -1e+09 }
 0x579   : > { %v2026_v19 = vsel %vm1929_vm8, %v2016_v18, -inf }
 0x57b   : > { %2024 = vmax.xlane.f32.xlu1 %v2023_v15 }
 0x57d   : > { %v2005_v17 = vpop.f32.mrf.mxu1 }
 0x583   : > { %2027 = vmax.xlane.f32.xlu1 %v2026_v19 }
 0x593   : > { %4136 = vxpose.binary.xlu2.c.b16.start.end [1/2] (short) (narrow) %v1473_v25, %v1472_v24, 16 }
 0x59b   : > { %4139 = vxpose.binary.xlu0.c.b16.start.end [1/2] (short) (narrow) %v1479_v29, %v1478_v28, 16 }
 0x5b7   : > { %v4134_v30 = vpop.trf.xlu1 }
 0x5b8   : > { %v2193_v56 = vrot.slane %v4134_v30, 4 }
 0x5bf   : > { %v4135_v31 = vpop.trf.xlu1 }
 0x5c0   : > { %v2221_v62 = vrot.slane %v4135_v31, 4 }
 0x5c7   : > { %v4143_v32 = vpop.trf.xlu1 }
 0x5cf   : > { %v4144_v33 = vpop.trf.xlu1 }
 0x5dd   : > { %v2019_v39 = vpop.xlane.xlu2 %2018 }
 0x5de   : > { %v2029_v49 = vsub.f32 %v2013_v0, %v2019_v39 }
 0x5e0   : > { %v2033_v50 = vmul.f32 1.442695, %v2029_v49 }
 0x5e5   : > { %v2022_v34 = vpop.xlane.xlu0 %2021 }
 0x5e6   : > { %v2030_v36 = vsub.f32 %v2014_v7, %v2022_v34 }
 0x5e8   : > { %v2035_v42 = vmul.f32 1.442695, %v2030_v36 }
 0x5ea   : > { %4183 = vpow2.f32 %v2035_v42 }
 0x5ee   : > { %v2025_v43 = vpop.xlane.xlu1 %2024 }
 0x5ef   : > { %v2031_v38 = vsub.f32 %v2015_v14, %v2025_v43 }
 0x5f0   : > { %v5503_v44 = vpop.eup %4183 }
 0x5f1   : > { %v2044_v41 = vsel %vm1929_vm8, %v5503_v44, 0.0  ;;  %v2037_v45 = vmul.f32 1.442695, %v2031_v38 }
 0x5f2   : > { %2045 = vadd.xlane.f32.xlu1 %v2044_v41 }
 0x5f3   : > { %4185 = vpow2.f32 %v2037_v45 }
 0x5f6   : > { %v2028_v46 = vpop.xlane.xlu1 %2027 }
 0x5f7   : > { %v2032_v47 = vsub.f32 %v2016_v18, %v2028_v46 }
 0x5f9   : > { %v2039_v48 = vmul.f32 1.442695, %v2032_v47  ;;  %v5507_v40 = vpop.eup %4185 }
 0x5fa   : > { %v2047_v35 = vsel %vm1929_vm8, %v5507_v40, 0.0 }
 0x5fb   : > { %4187 = vpow2.f32 %v2039_v48 }
 0x5fc   : > { %4189 = vpow2.f32 %v2033_v50 }
 0x601   : > { %v5509_v51 = vpop.eup %4187 }
 0x602   : > { %v2050_v53 = vsel %vm1929_vm8, %v5509_v51, 0.0  ;;  %v5515_v54 = vpop.eup %4189 }
 0x603   : > { %2051 = vadd.xlane.f32.xlu1 %v2050_v53  ;;  %v2041_v37 = vsel %vm1929_vm8, %v5515_v54, 0.0 }
 0x604   : > { %2048 = vadd.xlane.f32.xlu2 %v2047_v35 }
 0x60c   : > { %2042 = vadd.xlane.f32.xlu0 %v2041_v37 }
 0x634   : > { %v4137_v55 = vpop.trf.xlu2 }
 0x635   : > { %v2194_v57 = vsel %vm1264_vm6, %v2193_v56, %v4137_v55 }
 0x636   : > { %v2198_v58 = vperm.slane %v2194_v57, %v5365_v52 }
 0x638   : > { %v2207_v0 = vrot.slane %v2198_v58, 4 }
 0x63c   : > { %v4138_v61 = vpop.trf.xlu2 }
 0x63d   : > { %v2222_v3 = vsel %vm1264_vm6, %v2221_v62, %v4138_v61 }
 0x63e   : > { %v2226_v6 = vperm.slane %v2222_v3, %v5365_v52 }
 0x640   : > { %v2235_v14 = vrot.slane %v2226_v6, 4 }
 0x647   : > { %v4140_v59 = vpop.trf.xlu0 }
 0x648   : > { %v2199_v60 = vrot.slane %v4140_v59, 4 }
 0x64a   : > { %v2200_v63 = vsel %vm1264_vm6, %v2199_v60, %v4143_v32 }
 0x64b   : > { %v2204_v1 = vperm.slane %v2200_v63, %v5365_v52 }
 0x64d   : > { %v2205_v4 = vrot.slane %v2204_v1, 4  ;;  %v2208_v5 = vsel %vm1264_vm6, %v2204_v1, %v2207_v0 }
 0x64e   : > { %v2216_v8 = vperm.slane %v2208_v5, %v5374_v2 }
 0x64f   : > { %v2206_v7 = vsel %vm1264_vm6, %v2205_v4, %v2198_v58  ;;  %v4141_v10 = vpop.trf.xlu0 }
 0x650   : > { %v2227_v11 = vrot.slane %v4141_v10, 4  ;;  %v2212_v12 = vperm.slane %v2206_v7, %v5374_v2  ;;  %v2219_v16 = vrot.slane %v2216_v8, 4  ;;  %v2269_v22 = vshrl.u32 %v2216_v8, 16 }
 0x652   : > { %v2228_v13 = vsel %vm1264_vm6, %v2227_v11, %v4144_v33  ;;  %v2217_v19 = vrot.slane %v2212_v12, 4  ;;  %v2220_v23 = vsel %vm1264_vm6, 0, %v2219_v16  ;;  %v2253_v29 = vshrl.u32 %v2212_v12, 16 }
 0x653   : > { %v2232_v15 = vperm.slane %v2228_v13, %v5365_v52  ;;  %v2277_v36 = vshrl.u32 %v2220_v23, 16 }
 0x654   : > { %v2218_v28 = vsel %vm1264_vm6, 0, %v2217_v19 }
 0x655   : > { %v2233_v17 = vrot.slane %v2232_v15, 4  ;;  %v2236_v18 = vsel %vm1264_vm6, %v2232_v15, %v2235_v14  ;;  %v2261_v38 = vshrl.u32 %v2218_v28, 16 }
 0x656   : > { %v2244_v20 = vperm.slane %v2236_v18, %v5374_v2 }
 0x657   : > { %v2234_v21 = vsel %vm1264_vm6, %v2233_v17, %v2226_v6 }
 0x658   : > { %v2240_v24 = vperm.slane %v2234_v21, %v5374_v2  ;;  %v2267_v25 = vpack.i.b16 %v2244_v20, %v2216_v8  ;;  %v2270_v26 = vshrl.u32 %v2244_v20, 16  ;;  %v2247_v27 = vrot.slane %v2244_v20, 4 }
 0x65a   : > { %v2271_v30 = vpack.i.b16 %v2270_v26, %v2269_v22  ;;  %v2248_v31 = vsel %vm1264_vm6, 0, %v2247_v27  ;;  %v2245_v32 = vrot.slane %v2240_v24, 4  ;;  %v2251_v33 = vpack.i.b16 %v2240_v24, %v2212_v12 }
 0x65b   : > { %v2275_v34 = vpack.i.b16 %v2248_v31, %v2220_v23  ;;  %v2278_v42 = vshrl.u32 %v2248_v31, 16  ;;  %v2254_v43 = vshrl.u32 %v2240_v24, 16 }
 0x65c   : > { %4151 = vxpose.binary.xlu0.c.b16.start.end [1/2] (short) (narrow) %v2271_v30, %v2267_v25, 16  ;;  %v2246_v41 = vsel %vm1264_vm6, 0, %v2245_v32 }
 0x65d   : > { %v2279_v45 = vpack.i.b16 %v2278_v42, %v2277_v36  ;;  %v2259_v46 = vpack.i.b16 %v2246_v41, %v2218_v28  ;;  %v2262_v39 = vshrl.u32 %v2246_v41, 16  ;;  %v2255_v47 = vpack.i.b16 %v2254_v43, %v2253_v29 }
 0x65f   : > { %4145 = vxpose.binary.xlu1.c.b16.start.end [1/2] (short) (narrow) %v2279_v45, %v2275_v34, 16  ;;  %v2263_v48 = vpack.i.b16 %v2262_v39, %v2261_v38 }
 0x661   : > { %4148 = vxpose.binary.xlu2.c.b16.start.end [1/2] (short) (narrow) %v2263_v48, %v2259_v46, 16 }
 0x665   : > { %v2046_v49 = vpop.xlane.xlu1 %2045 }
 0x666   : > { %4191 = vrcp.f32 %v2046_v49 }
 0x66c   : > { %v4192_v50 = vpop.eup %4191 }
 0x66d   : > { %v2058_v53 = vmul.f32 %v4192_v50, %v5503_v44 }
 0x66f   : > { %v2062_v35 = vpack.c.bf16 %v2058_v53, %v2058_v53 }
 0x671   : > { %4154 = vxpose.binary.xlu2.c.b16.start.end [1/2] (short) (narrow) %v2255_v47, %v2251_v33, 16  ;;  %v2484_v37 = vsel %vm1929_vm8, %v2062_v35, 0 }
 0x672   : > { %2493 = vmatpush.bf16.xpose.msrb.mxu3 %v2484_v37 }
 0x676   : > { %v2052_v55 = vpop.xlane.xlu1 %2051 }
 0x677   : > { %4193 = vrcp.f32 %v2052_v55  ;;  %v2049_v56 = vpop.xlane.xlu2 %2048 }
 0x678   : > { %4195 = vrcp.f32 %v2049_v56 }
 0x67d   : > { %v4194_v57 = vpop.eup %4193 }
 0x67e   : > { %v4196_v58 = vpop.eup %4195  ;;  %v2060_v59 = vmul.f32 %v4194_v57, %v5509_v51 }
 0x67f   : > { %v2043_v60 = vpop.xlane.xlu0 %2042  ;;  %v2059_v61 = vmul.f32 %v4196_v58, %v5507_v40 }
 0x680   : > { %4197 = vrcp.f32 %v2043_v60  ;;  %v2064_v62 = vpack.c.bf16 %v2060_v59, %v2060_v59 }
 0x681   : > { %v2063_v63 = vpack.c.bf16 %v2059_v61, %v2059_v61 }
 0x682   : > { %v2522_v0 = vsel %vm1929_vm8, %v2064_v62, 0 }
 0x683   : > { %v2503_v44 = vsel %vm1929_vm8, %v2063_v63, 0 }
 0x684   : > { %2512 = vmatpush.bf16.xpose.msra.mxu1 %v2503_v44 }
 0x686   : > { %v4198_v1 = vpop.eup %4197 }
 0x687   : > { %v2057_v3 = vmul.f32 %v4198_v1, %v5515_v54 }
 0x689   : > { %v2061_v4 = vpack.c.bf16 %v2057_v3, %v2057_v3 }
 0x68b   : > { %v2465_v5 = vsel %vm1929_vm8, %v2061_v4, 0 }
 0x68c   : > { %2531 = vmatpush.bf16.xpose.msrb.mxu1 %v2522_v0  ;;  %2474 = vmatpush.bf16.xpose.msrb.mxu2 %v2465_v5 }
 0x702   : > { %v4149_v51 = vpop.trf.xlu2 }
 0x708   : > { %v4152_v7 = vpop.trf.xlu0 }
 0x709   : > { %v2409_v11 = vrot.slane %v4152_v7, 4 }
 0x70a   : > { %v4150_v6 = vpop.trf.xlu2 }
 0x70b   : > { %v4146_v40 = vpop.trf.xlu1 }
 0x70c   : > { %v2415_v8 = vrot.slane %v4146_v40, 4 }
 0x70e   : > { %v2416_v10 = vsel %vm1264_vm6, %v2415_v8, %v4149_v51 }
 0x70f   : > { %v2420_v12 = vperm.slane %v2416_v10, %v5365_v52 }
 0x710   : > { %v4153_v17 = vpop.trf.xlu0 }
 0x711   : > { %v2421_v18 = vrot.slane %v2420_v12, 4  ;;  %v2429_v20 = vrot.slane %v4153_v17, 4 }
 0x712   : > { %v4155_v13 = vpop.trf.xlu2 }
 0x713   : > { %v2410_v14 = vsel %vm1264_vm6, %v2409_v11, %v4155_v13  ;;  %v4147_v15 = vpop.trf.xlu1 }
 0x714   : > { %v2414_v54 = vperm.slane %v2410_v14, %v5365_v52  ;;  %v2435_v16 = vrot.slane %v4147_v15, 4 }
 0x716   : > { %v2436_v19 = vsel %vm1264_vm6, %v2435_v16, %v4150_v6  ;;  %v2422_v21 = vsel %vm1264_vm6, %v2421_v18, %v2414_v54 }
 0x717   : > { %v2440_v22 = vperm.slane %v2436_v19, %v5365_v52  ;;  %v2426_v24 = vperm.slane %v2422_v21, %v5374_v2 }
 0x719   : > { %v2441_v26 = vrot.slane %v2440_v22, 4  ;;  %v2427_v29 = vrot.slane %v2426_v24, 4  ;;  %v2452_v33 = vshrl.u32 %v2426_v24, 16 }
 0x71a   : > { %v4156_v23 = vpop.trf.xlu2 }
 0x71b   : > { %v2430_v25 = vsel %vm1264_vm6, %v2429_v20, %v4156_v23  ;;  %v2428_v42 = vsel %vm1264_vm6, 0, %v2427_v29 }
 0x71c   : > { %v2434_v27 = vperm.slane %v2430_v25, %v5365_v52  ;;  %v2458_v45 = vshrl.u32 %v2428_v42, 16 }
 0x71e   : > { %v2442_v28 = vsel %vm1264_vm6, %v2441_v26, %v2434_v27 }
 0x71f   : > { %v2446_v30 = vperm.slane %v2442_v28, %v5374_v2 }
 0x721   : > { %v2447_v31 = vrot.slane %v2446_v30, 4  ;;  %v2451_v32 = vpack.i.b16 %v2446_v30, %v2426_v24  ;;  %v2453_v34 = vshrl.u32 %v2446_v30, 16 }
 0x723   : > { %3729 = vmatmul.msk.bf16.vlgmr.msrb.gmra.mxu2 %vm1929_vm8, %v2451_v32  ;;  %v2454_v36 = vpack.i.b16 %v2453_v34, %v2452_v33  ;;  %v2448_v43 = vsel %vm1264_vm6, 0, %v2447_v31 }
 0x724   : > { %v2457_v41 = vpack.i.b16 %v2448_v43, %v2428_v42  ;;  %v2459_v38 = vshrl.u32 %v2448_v43, 16 }
 0x725   : > { %3730 = vmatmul.msk.bf16.vlgmr.msrb.gmra.mxu3 %vm1929_vm8, %v2454_v36 }
 0x726   : > { %3731 = vmatmul.msk.bf16.vlgmr.msra.gmra.mxu1 %vm1929_vm8, %v2457_v41  ;;  %v2460_v46 = vpack.i.b16 %v2459_v38, %v2458_v45 }
 0x736   : > { %3732 = vmatmul.msk.bf16.vlgmr.msrb.gmra.mxu1 %vm1929_vm8, %v2460_v46 }
 0x7a3   : > { %v2514_v39 = vpop.f32.mrf.mxu1 }
 0x7a6   : > { %v2476_v47 = vpop.f32.mrf.mxu2 }
 0x7a7   : > { %v4157_v48 = vpack.i.bf16 %v2476_v47, %v2514_v39 }
 0x7a8   : > { %v2495_v49 = vpop.f32.mrf.mxu3 }
 0x7a9   : > { %4158 = vxpose.xlu0.b32.start.end [1/1] (short) (narrow) %v4157_v48, 8 }
 0x7ab   : > { %v2516_v50 = vpop.f32.mrf.mxu1 }
 0x7ae   : > { %v2478_v53 = vpop.f32.mrf.mxu2 }
 0x7b0   : > { %v2497_v35 = vpop.f32.mrf.mxu3 }
 0x7b3   : > { %v2533_v37 = vpop.f32.mrf.mxu1 }
 0x7b4   : > { %v4164_v55 = vpack.i.bf16 %v2495_v49, %v2533_v37 }
 0x7b6   : > { %4165 = vxpose.xlu1.b32.start.end [1/1] (short) (narrow) %v4164_v55, 8 }
 0x7bb   : > { %v2535_v56 = vpop.f32.mrf.mxu1 }
 0x84d   : > { %v4159_v57 = vpop.trf.xlu0 }
 0x84e   : > { %v4163_v58 = vunpack.i.h.bf16 %v4159_v57  ;;  %v4160_v59 = vunpack.i.l.bf16 %v4159_v57 }
 0x850   : > { %v2667_v60 = vrot.slane %v4163_v58, 4  ;;  %v2665_v61 = vrot.slane %v4160_v59, 4 }
 0x852   : > { %v2666_v62 = vsel %vm1264_vm6, %v2665_v61, %v4163_v58  ;;  %v2668_v63 = vsel %vm1264_vm6, %v4160_v59, %v2667_v60 }
 0x853   : > { %v2672_v3 = vperm.slane %v2666_v62, %v5365_v52  ;;  %v2676_v4 = vperm.slane %v2668_v63, %v5365_v52  ;;  %v3855_v63 = vld [vmem:[%s5878_s25 + $0x8] sm:$0xff] }
 0x854   : > { %2822 = vmatpush.bf16.msra.mxu2 %v3855_v63 }
 0x855   : > { %v2691_v40 = vrot.slane %v2672_v3, 4  ;;  %v2703_v8 = vrot.slane %v2676_v4, 4 }
 0x85a   : > { %v4166_v44 = vpop.trf.xlu1 }
 0x85b   : > { %v4170_v0 = vunpack.i.h.bf16 %v4166_v44  ;;  %v4167_v1 = vunpack.i.l.bf16 %v4166_v44 }
 0x85d   : > { %v2679_v5 = vrot.slane %v4170_v0, 4  ;;  %v2677_v51 = vrot.slane %v4167_v1, 4 }
 0x85f   : > { %v2678_v6 = vsel %vm1264_vm6, %v2677_v51, %v4170_v0  ;;  %v2680_v7 = vsel %vm1264_vm6, %v4167_v1, %v2679_v5 }
 0x860   : > { %v2684_v10 = vperm.slane %v2678_v6, %v5365_v52  ;;  %v2688_v11 = vperm.slane %v2680_v7, %v5365_v52  ;;  %v4174_v6 = vld [vmem:[%s5880_s15] ss:$0 sm:$0xff]  ;;  %s5890_s15 = sld [smem:[#allocation70_spill]] (!%p3783_p9) }
 0x862   : > { %v2689_v12 = vrot.slane %v2684_v10, 4  ;;  %v2692_v13 = vsel %vm1264_vm6, %v2684_v10, %v2691_v40  ;;  %v2701_v14 = vrot.slane %v2688_v11, 4  ;;  %v2704_v15 = vsel %vm1264_vm6, %v2688_v11, %v2703_v8  ;;  %v4203_v8 = vld [vmem:[#allocation2] sm:$0xff] }
 0x863   : > { %v2700_v54 = vperm.slane %v2692_v13, %v5374_v2  ;;  %v2712_v16 = vperm.slane %v2704_v15, %v5374_v2 }
 0x864   : > { %v2690_v17 = vsel %vm1264_vm6, %v2689_v12, %v2672_v3  ;;  %v2702_v18 = vsel %vm1264_vm6, %v2701_v14, %v2676_v4 }
 0x865   : > { %v2696_v19 = vperm.slane %v2690_v17, %v5374_v2  ;;  %v2708_v20 = vperm.slane %v2702_v18, %v5374_v2  ;;  %v2715_v21 = vrot.slane %v2700_v54, 4  ;;  %v2719_v22 = vrot.slane %v2712_v16, 4  ;;  %v3857_v17 = vld [vmem:[%s5881_s14 + $0x8] sm:$0xff] }
 0x866   : > { %2892 = vmatpush.bf16.msra.mxu3 %v3857_v17  ;;  %v3856_v18 = vld [vmem:[%s5882_s27] sm:$0xff] }
 0x867   : > { %v2716_v23 = vsel %vm1264_vm6, 0.0, %v2715_v21  ;;  %v2713_v24 = vrot.slane %v2696_v19, 4  ;;  %v2717_v25 = vrot.slane %v2708_v20, 4  ;;  %v2720_v26 = vsel %vm1264_vm6, 0.0, %v2719_v22 }
 0x868   : > { %v2721_v27 = vsel %vm1264_vm6, %v2715_v21, %v2696_v19  ;;  %v2726_v28 = vrot.slane %v2716_v23, 4  ;;  %v2732_v29 = vsel %vm1264_vm6, %v2719_v22, %v2708_v20  ;;  %v2737_v30 = vrot.slane %v2720_v26, 4  ;;  %v3865_v19 = vld [vmem:[%s5279_s23 + $0x38] sm:$0xff]  ;;  %v3864_v22 = vld [vmem:[%s5279_s23 + $0x30] sm:$0xff] }
 0x869   : > { %v2714_v31 = vsel %vm1264_vm6, 0.0, %v2713_v24  ;;  %v2718_v32 = vsel %vm1264_vm6, 0.0, %v2717_v25  ;;  %v2725_v33 = vperm.slane %v2721_v27, %v5365_v52  ;;  %v2736_v34 = vperm.slane %v2732_v29, %v5365_v52  ;;  %2977 = vmatpush.bf16.msrb.mxu0 %v3865_v19 }
 0x86a   : > { %v2727_v36 = vsel %vm1264_vm6, %v2726_v28, %v2714_v31  ;;  %v2738_v42 = vsel %vm1264_vm6, %v2737_v30, %v2718_v32  ;;  %2893 = vmatpush.bf16.msra.mxu3 %v3856_v18  ;;  %v4176_v32 = vld [vmem:[%s1158_s7] ss:$0 sm:$0xff] }
 0x86b   : > { %v2731_v43 = vperm.slane %v2727_v36, %v5365_v52  ;;  %v2742_v41 = vperm.slane %v2738_v42, %v5365_v52  ;;  %v2745_v38 = vrot.slane %v2725_v33, 4  ;;  %v2757_v45 = vrot.slane %v2736_v34, 4  ;;  %v3863_v42 = vld [vmem:[%s5279_s23 + $0x28] sm:$0xff] }
 0x86d   : > { %v2746_v46 = vsel %vm1264_vm6, %v2731_v43, %v2745_v38  ;;  %v2758_v39 = vsel %vm1264_vm6, %v2742_v41, %v2757_v45  ;;  %v2743_v47 = vrot.slane %v2731_v43, 4  ;;  %v2755_v48 = vrot.slane %v2742_v41, 4  ;;  %2978 = vmatpush.bf16.msrb.mxu0 %v3864_v22  ;;  %v3862_v43 = vld [vmem:[%s5279_s23 + $0x20] sm:$0xff]  ;;  %v3861_v41 = vld [vmem:[%s5279_s23 + $0x18] sm:$0xff]  ;;  %v3860_v38 = vld [vmem:[%s5279_s23 + $0x10] sm:$0xff] }
 0x86e   : > { %v2754_v49 = vperm.slane %v2746_v46, %v5374_v2  ;;  %v2766_v50 = vperm.slane %v2758_v39, %v5374_v2  ;;  %v3859_v45 = vld [vmem:[%s5279_s23 + $0x8] sm:$0xff]  ;;  %v3858_v46 = vld [vmem:[%s5279_s23] sm:$0xff] }
 0x86f   : > { %v2744_v53 = vsel %vm1264_vm6, %v2743_v47, %v2725_v33  ;;  %v2756_v35 = vsel %vm1264_vm6, %v2755_v48, %v2736_v34 }
 0x870   : > { %v2773_v37 = vrot.slane %v2754_v49, 4  ;;  %v2771_v55 = vrot.slane %v2766_v50, 4  ;;  %v2750_v52 = vperm.slane %v2744_v53, %v5374_v2  ;;  %v2762_v56 = vperm.slane %v2756_v35, %v5374_v2  ;;  %v3854_v2 = vld [vmem:[%s5879_s6] sm:$0xff] }
 0x871   : > { %2823 = vmatpush.bf16.msra.mxu2 %v3854_v2  ;;  %2979 = vmatpush.bf16.msrb.mxu0 %v3863_v42 }
 0x872   : > { %v2774_v57 = vsel %vm1264_vm6, %v2766_v50, %v2773_v37  ;;  %v2772_v58 = vsel %vm1264_vm6, %v2771_v55, %v2754_v49  ;;  %v2767_v59 = vrot.slane %v2762_v56, 4  ;;  %v2769_v60 = vrot.slane %v2750_v52, 4 }
 0x873   : > { %2784 = vrot.lane.b32.xlu1 %v2774_v57, %s4805_s22  ;;  %2780 = vrot.lane.b32.xlu0 %v2772_v58, %s4806_s1  ;;  %s5888_s22 = sld [smem:[#allocation67_spill]] (!%p3783_p9) }
 0x874   : > { %v2770_v61 = vsel %vm1264_vm6, %v2762_v56, %v2769_v60  ;;  %v2768_v62 = vsel %vm1264_vm6, %v2767_v59, %v2750_v52  ;;  %v4178_v60 = vld [vmem:[%s1161_s28] ss:$0 sm:$0xff]  ;;  %s5889_s28 = scalar_lea.vmem (!%p3783_p9), [#allocation6], %s5236_s26 }
 0x875   : > { %2776 = vrot.lane.b32.xlu2 %v2770_v61, %s4807_s10  ;;  %2980 = vmatpush.bf16.msrb.mxu0 %v3862_v43  ;;  %s4808_s10 = smov (!%p3783_p9), 96  }
 0x879   : > { %2981 = vmatpush.bf16.msrb.mxu0 %v3861_v41 }
 0x87d   : > { %2982 = vmatpush.bf16.msrb.mxu0 %v3860_v38 }
 0x881   : > { %2983 = vmatpush.bf16.msrb.mxu0 %v3859_v45 }
 0x885   : > { %2984 = vmatpush.bf16.msrb.mxu0 %v3858_v46 }
 0x8cf   : > { %v2777_v44 = vpop.permute.xlu2 %2776 }
 0x8d0   : > { %v2787_v0 = vsel %vm1929_vm8, %v2768_v62, %v2777_v44 }
 0x8e5   : > { %v2785_v1 = vpop.permute.xlu1 %2784  ;;  %v2781_v3 = vpop.permute.xlu0 %2780 }
 0x8e6   : > { %v2789_v4 = vsel %vm2788_vm10, %v2787_v0, %v2781_v3 }
 0x8e7   : > { %v2791_v5 = vsel %vm2790_vm11, %v2789_v4, %v2785_v1 }
 0x8e8   : > { %v2796_v51 = vpack.c.bf16 %v2791_v5, %v2791_v5 }
 0x8ea   : > { %3741 = vmatmul.msk.bf16.vlgmr.msra.gmra.mxu2 %vm1173_vm1, %v2796_v51 }
 0x96d   : > { %v2825_v7 = vpop.f32.mrf.mxu2 }
 0x96e   : > { %v2826_v40 = vadd.f32 %v4174_v6, %v2825_v7 }
 0x970   : > { %v5614_v10 = vadd.f32 %v4203_v8, %v2826_v40 }
 0x972   : > { %v2832_v11 = vsel %vm1173_vm1, %v5614_v10, 0.0 }
 0x973   : > { %2833 = vadd.xlane.f32.xlu1 %v2832_v11 }
 0x975   : > { %v2827_v12 = vpop.f32.mrf.mxu2 }
 0x9e6   : > { %v2834_v13 = vpop.xlane.xlu1 %2833 }
 0x9e7   : > { %v2835_v14 = vmul.f32 %v2834_v13, %v5322_v9 }
 0x9e9   : > { %v2836_v15 = vsub.f32 %v5614_v10, %v2835_v14 }
 0x9eb   : > { %v2837_v54 = vmul.f32 %v2836_v15, %v2836_v15 }
 0x9ed   : > { %v2838_v16 = vsel %vm1173_vm1, %v2837_v54, 0.0 }
 0x9ee   : > { %2839 = vadd.xlane.f32.xlu2 %v2838_v16 }
 0xa61   : > { %v2840_v20 = vpop.xlane.xlu2 %2839 }
 0xa62   : > { %v2841_v21 = vmul.f32 %v2840_v20, %v5322_v9  ;;  %v4175_v9 = vld [vmem:[%s1155_s29] ss:$0 sm:$0xff]  ;;  %s5885_s29 = scalar_lea.vmem [#allocation15], %s5251_s3 }
 0xa63   : > { %v4177_v39 = vld [vmem:[%s5885_s29] ss:$0 sm:$0xff] }
 0xa64   : > { %v2842_v23 = vadd.f32 1e-06, %v2841_v21 }
 0xa66   : > { %4199 = vrsqrt.f32 %v2842_v23  ;;  %vm2849_vm13 = vweird.f32 %v2842_v23 }
 0xa6c   : > { %v4200_v24 = vpop.eup %4199 }
 0xa6d   : > { %v2844_v25 = vmul.f32 %v4200_v24, %v2842_v23  ;;  %vm2850_vm12 = vweird.f32 %v4200_v24 }
 0xa6e   : > { %vm2851_vm14 = vmor %vm2849_vm13, %vm2850_vm12 }
 0xa6f   : > { %v2845_v26 = vmul.f32 %v4200_v24, %v2844_v25 }
 0xa71   : > { %v2846_v27 = vmul.f32 0.5, %v2845_v26 }
 0xa73   : > { %v2847_v28 = vsub.f32 1.5, %v2846_v27 }
 0xa75   : > { %v2848_v29 = vmul.f32 %v4200_v24, %v2847_v28 }
 0xa77   : > { %v2852_v30 = vsel %vm2851_vm14, %v4200_v24, %v2848_v29 }
 0xa78   : > { %v2853_v31 = vmul.f32 %v2852_v30, %v2836_v15 }
 0xa7a   : > { %v2857_v33 = vmul.f32 %v4175_v9, %v2853_v31 }
 0xa7c   : > { %v2861_v34 = vadd.f32 %v4176_v32, %v2857_v33 }
 0xa7e   : > { %v2866_v36 = vpack.c.bf16 %v2861_v34, %v2861_v34 }
 0xa80   : > { %3750 = vmatmul.msk.bf16.vlgmr.msra.gmra.mxu3 %vm1173_vm1, %v2866_v36 }
 0xb03   : > { %v2895_v47 = vpop.f32.mrf.mxu3 }
 0xb04   : > { %v2896_v48 = vadd.f32 %v4177_v39, %v2895_v47 }
 0xb06   : > { %v2900_v49 = vmul.f32 0.044715, %v2896_v48  ;;  %v2899_v56 = vmul.f32 0.5, %v2896_v48 }
 0xb08   : > { %v2901_v50 = vmul.f32 %v2900_v49, %v2896_v48 }
 0xb0a   : > { %v2902_v53 = vmul.f32 %v2901_v50, %v2896_v48 }
 0xb0b   : > { %v2897_v35 = vpop.f32.mrf.mxu3 }
 0xb0c   : > { %v2903_v37 = vadd.f32 %v2902_v53, %v2896_v48 }
 0xb0e   : > { %v2904_v55 = vmul.f32 0.7978846, %v2903_v37 }
 0xb10   : > { %4201 = vtanh.f32 %v2904_v55 }
 0xb16   : > { %v4202_v52 = vpop.eup %4201 }
 0xb17   : > { %v2906_v57 = vadd.f32 1.0, %v4202_v52 }
 0xb19   : > { %v2907_v58 = vmul.f32 %v2906_v57, %v2899_v56 }
 0xb1b   : > { %v2924_v59 = vpack.c.bf16 %v2907_v58, %v2907_v58 }
 0xb1d   : > { %2985 = vmatmul.bf16.vlgmr.msrb.gmra.mxu0 %v2924_v59 }
 0xb9a   : > { %v2986_v61 = vpop.f32.mrf.mxu0 }
 0xb9b   : > { %v2987_v62 = vadd.f32 %v4178_v60, %v2986_v61 }
 0xb9d   : > { %v2990_v63 = vadd.f32 %v2987_v62, %v5614_v10 }
 0xb9e   : > { %2995 = sbr.rel (%p3783_p9) target bundleno = 3541 (0xdd5), region = 172 }
 0xb9f   : > { %2991 = vst.msk [vmem:[#allocation2] sm:$0xff] %vm1173_vm1, %v2990_v63 }
 0xba2   : > { %v2988_v2 = vpop.f32.mrf.mxu0 }
 0xba3   : > { %v3867_v44 = vld [vmem:[#allocation18 + $0x8] sm:$0xff]  ;;  %v3869_v0 = vld [vmem:[%s5888_s22 + $0x8] sm:$0xff]  ;;  %v3868_v3 = vld [vmem:[%s5888_s22] sm:$0xff]  ;;  %v3001_v5 = vpack.c.bf16 %v2990_v63, %v2990_v63  ;;  %v4809_v13 = vmov 8.0   ;;  %vm3118_vm4 = vcmask 1040384   ;;  %vm3122_vm5 = vcmask 1046528  }
 0xba4   : > { %v3866_v1 = vld [vmem:[#allocation18] sm:$0xff]  ;;  %3027 = vmatpush.bf16.msra.mxu0 %v3867_v44  ;;  %3065 = vmatpush.bf16.msra.mxu1 %v3869_v0  ;;  %v2996_v4 = vld [vmem:[%s5889_s28] sm:$0xff]  ;;  %4208 = vrcp.f32 %v4809_v13 }
 0xba5   : > { %v3039_v51 = vpack.c.bf16 %v2996_v4, %v2996_v4  ;;  %v4204_v6 = vld [vmem:[#allocation20] ss:$0 sm:$0xff]  ;;  %v4205_v7 = vld [vmem:[#allocation21] ss:$0 sm:$0xff]  ;;  %v3875_v45 = vld [vmem:[#allocation23 + $0x28] sm:$0xff] }
 0xba6   : > { %v3873_v20 = vld [vmem:[#allocation23 + $0x18] sm:$0xff]  ;;  %v3871_v46 = vld [vmem:[#allocation23 + $0x8] sm:$0xff]  ;;  %v3872_v39 = vld [vmem:[#allocation23 + $0x10] sm:$0xff] }
 0xba7   : > { %3159 = vmatpush.bf16.msra.mxu2 %v3873_v20  ;;  %3187 = vmatpush.bf16.msra.mxu3 %v3871_v46  ;;  %v3870_v48 = vld [vmem:[#allocation23] sm:$0xff] }
 0xba8   : > { %3028 = vmatpush.bf16.msra.mxu0 %v3866_v1  ;;  %3066 = vmatpush.bf16.msra.mxu1 %v3868_v3  ;;  %v3874_v49 = vld [vmem:[#allocation23 + $0x20] sm:$0xff]  ;;  %v3876_v1 = vld [vmem:[#allocation24] sm:$0xff] }
 0xba9   : > { %v3878_v3 = vld [vmem:[#allocation24 + $0x10] sm:$0xff] }
 0xbaa   : > { %v4209_v17 = vpop.eup %4208 }
 0xbab   : > { %3792 = vmatmul.msk.bf16.vlgmr.msra.gmra.mxu0 %vm1173_vm1, %v3001_v5  ;;  %3801 = vmatmul.msk.bf16.vlgmr.msra.gmra.mxu1 %vm1173_vm1, %v3039_v51  ;;  %v3080_v19 = vmul.f32 8.0, %v4209_v17  ;;  %vm3084_vm15 = vweird.f32 %v4209_v17 }
 0xbac   : > { %3216 = vmatpush.bf16.msrb.mxu0 %v3875_v45  ;;  %3160 = vmatpush.bf16.msra.mxu2 %v3872_v39 }
 0xbad   : > { %v3081_v22 = vsub.f32 1.0, %v3080_v19  ;;  %3188 = vmatpush.bf16.msra.mxu3 %v3870_v48 }
 0xbaf   : > { %v3082_v24 = vmul.f32 %v4209_v17, %v3081_v22 }
 0xbb0   : > { %3217 = vmatpush.bf16.msrb.mxu0 %v3874_v49  ;;  %3291 = vmatpush.bf16.msrb.mxu2 %v3876_v1 }
 0xbb1   : > { %v3083_v26 = vadd.f32 %v4209_v17, %v3082_v24  ;;  %3314 = vmatpush.bf16.msrb.mxu3 %v3878_v3 }
 0xbb3   : > { %v3085_v28 = vsel %vm3084_vm15, %v4209_v17, %v3083_v26 }
 0xc28   : > { %v3030_v40 = vpop.f32.mrf.mxu0  ;;  %v3068_v8 = vpop.f32.mrf.mxu1 }
 0xc29   : > { %v3031_v10 = vadd.f32 %v4204_v6, %v3030_v40  ;;  %v3069_v11 = vadd.f32 %v4205_v7, %v3068_v8  ;;  %v4206_v40 = vld [vmem:[%s5890_s15] ss:$0 sm:$0xff] }
 0xc2b   : > { %v3034_v12 = vadd.f32 %v3031_v10, %v2996_v4  ;;  %3111 = vrot.lane.b32.xlu0 %v3069_v11, %s4808_s10  ;;  %v3877_v4 = vld [vmem:[#allocation24 + $0x8] sm:$0xff] }
 0xc2c   : > { %3269 = vmatpush.bf16.msrb.mxu1 %v3877_v4 }
 0xc2d   : > { %v3072_v14 = vsel %vm1173_vm1, %v3034_v12, 0.0 }
 0xc2e   : > { %v3073_v16 = vrot.slane %v3072_v14, 4 }
 0xc30   : > { %v3070_v15 = vpop.f32.mrf.mxu1  ;;  %v3032_v54 = vpop.f32.mrf.mxu0  ;;  %v3074_v18 = vadd.f32 %v3073_v16, %v3072_v14 }
 0xc32   : > { %v3075_v21 = vrot.slane %v3074_v18, 2 }
 0xc34   : > { %v3076_v23 = vadd.f32 %v3075_v21, %v3074_v18 }
 0xc36   : > { %v3077_v25 = vrot.slane %v3076_v23, 1 }
 0xc38   : > { %v3078_v27 = vadd.f32 %v3077_v25, %v3076_v23 }
 0xc3a   : > { %v3086_v29 = vmul.f32 %v3085_v28, %v3078_v27 }
 0xc3c   : > { %v3087_v9 = vsub.f32 %v3034_v12, %v3086_v29 }
 0xc3e   : > { %v3088_v30 = vmul.f32 %v3087_v9, %v3087_v9 }
 0xc40   : > { %v3089_v31 = vsel %vm1173_vm1, %v3088_v30, 0.0 }
 0xc41   : > { %v3090_v32 = vrot.slane %v3089_v31, 4 }
 0xc43   : > { %v3091_v33 = vadd.f32 %v3090_v32, %v3089_v31 }
 0xc45   : > { %v3092_v34 = vrot.slane %v3091_v33, 2 }
 0xc47   : > { %v3093_v36 = vadd.f32 %v3092_v34, %v3091_v33  ;;  %v4207_v33 = vld [vmem:[%s5891_s16] ss:$0 sm:$0xff] }
 0xc49   : > { %v3094_v42 = vrot.slane %v3093_v36, 1 }
 0xc4b   : > { %v3095_v43 = vadd.f32 %v3094_v42, %v3093_v36 }
 0xc4d   : > { %v3096_v41 = vmul.f32 %v3095_v43, %v3085_v28 }
 0xc4f   : > { %v3097_v38 = vadd.f32 1e-05, %v3096_v41 }
 0xc51   : > { %4210 = vrsqrt.f32 %v3097_v38  ;;  %vm3104_vm0 = vweird.f32 %v3097_v38 }
 0xc57   : > { %v4211_v47 = vpop.eup %4210 }
 0xc58   : > { %v3099_v50 = vmul.f32 %v4211_v47, %v3097_v38  ;;  %vm3105_vm2 = vweird.f32 %v4211_v47 }
 0xc59   : > { %vm3106_vm3 = vmor %vm3104_vm0, %vm3105_vm2 }
 0xc5a   : > { %v3100_v53 = vmul.f32 %v4211_v47, %v3099_v50 }
 0xc5c   : > { %v3101_v35 = vmul.f32 0.5, %v3100_v53 }
 0xc5e   : > { %v3102_v37 = vsub.f32 1.5, %v3101_v35 }
 0xc60   : > { %v3103_v55 = vmul.f32 %v4211_v47, %v3102_v37 }
 0xc62   : > { %v3107_v52 = vsel %vm3106_vm3, %v4211_v47, %v3103_v55 }
 0xc63   : > { %v3108_v56 = vmul.f32 %v3107_v52, %v3087_v9 }
 0xc65   : > { %v3109_v57 = vmul.f32 %v3108_v56, %v3069_v11 }
 0xc9d   : > { %v3112_v58 = vpop.permute.xlu0 %3111 }
 0xc9e   : > { %v3114_v59 = vadd.f32 %v3112_v58, %v3109_v57 }
 0xca0   : > { %v3120_v60 = vrot.slane %v3114_v59, 1  ;;  %v3137_v61 = vpack.c.bf16 %v3114_v59, %v3114_v59  ;;  %v3116_v62 = vrot.slane %v3114_v59, 7 }
 0xca2   : > { %3810 = vmatmul.msk.bf16.vlgmr.msra.gmra.mxu2 %vm1173_vm1, %v3137_v61  ;;  %v3119_v63 = vsel %vm3118_vm4, 0.0, %v3116_v62  ;;  %v3123_v2 = vsel %vm3122_vm5, %v3120_v60, 0.0 }
 0xca3   : > { %v3136_v44 = vpack.c.bf16 %v3119_v63, %v3119_v63  ;;  %v3194_v0 = vpack.c.bf16 %v3123_v2, %v3123_v2 }
 0xca5   : > { %3819 = vmatmul.msk.bf16.vlgmr.msra.gmra.mxu3 %vm1173_vm1, %v3136_v44  ;;  %3828 = vmatmul.msk.bf16.vlgmr.msrb.gmra.mxu0 %vm1173_vm1, %v3194_v0 }
 0xd22   : > { %v3219_v5 = vpop.f32.mrf.mxu0 }
 0xd25   : > { %v3162_v51 = vpop.f32.mrf.mxu2 }
 0xd28   : > { %v3190_v6 = vpop.f32.mrf.mxu3 }
 0xd29   : > { %v3191_v7 = vadd.f32 %v3190_v6, %v3162_v51 }
 0xd2a   : > { %v3221_v8 = vpop.f32.mrf.mxu0 }
 0xd2b   : > { %v3223_v10 = vadd.f32 %v3219_v5, %v3191_v7 }
 0xd2d   : > { %v3228_v11 = vadd.f32 %v4206_v40, %v3223_v10  ;;  %v3164_v12 = vpop.f32.mrf.mxu2 }
 0xd2f   : > { %v3230_v13 = vmul.f32 0.044715, %v3228_v11  ;;  %v3229_v19 = vmul.f32 0.5, %v3228_v11 }
 0xd30   : > { %v3192_v14 = vpop.f32.mrf.mxu3 }
 0xd31   : > { %v3231_v15 = vmul.f32 %v3230_v13, %v3228_v11 }
 0xd33   : > { %v3232_v54 = vmul.f32 %v3231_v15, %v3228_v11 }
 0xd35   : > { %v3233_v16 = vadd.f32 %v3232_v54, %v3228_v11 }
 0xd37   : > { %v3234_v17 = vmul.f32 0.7978846, %v3233_v16 }
 0xd39   : > { %4212 = vtanh.f32 %v3234_v17 }
 0xd3f   : > { %v4213_v18 = vpop.eup %4212 }
 0xd40   : > { %v3236_v20 = vadd.f32 1.0, %v4213_v18 }
 0xd42   : > { %v3237_v21 = vmul.f32 %v3236_v20, %v3229_v19 }
 0xd44   : > { %v3252_v22 = vpack.c.bf16 %v3237_v21, %v3237_v21  ;;  %v3239_v23 = vrot.slane %v3237_v21, 7  ;;  %v3242_v24 = vrot.slane %v3237_v21, 1 }
 0xd46   : > { %3833 = vmatmul.msk.bf16.vlgmr.msrb.gmra.mxu1 %vm2788_vm10, %v3252_v22  ;;  %v3241_v25 = vsel %vm3118_vm4, 0.0, %v3239_v23  ;;  %v3244_v26 = vsel %vm3122_vm5, %v3242_v24, 0.0 }
 0xd47   : > { %v3251_v27 = vpack.c.bf16 %v3241_v25, %v3241_v25  ;;  %v3297_v28 = vpack.c.bf16 %v3244_v26, %v3244_v26 }
 0xd49   : > { %3838 = vmatmul.msk.bf16.vlgmr.msrb.gmra.mxu2 %vm2788_vm10, %v3251_v27  ;;  %3843 = vmatmul.msk.bf16.vlgmr.msrb.gmra.mxu3 %vm2788_vm10, %v3297_v28 }
 0xdc3   : > { %v3271_v29 = vpop.f32.mrf.mxu1 }
 0xdcb   : > { %v3273_v9 = vpop.f32.mrf.mxu1 }
 0xdcc   : > { %v3293_v30 = vpop.f32.mrf.mxu2  ;;  %v3316_v31 = vpop.f32.mrf.mxu3 }
 0xdcd   : > { %v3294_v32 = vadd.f32 %v3293_v30, %v3271_v29 }
 0xdcf   : > { %v3320_v34 = vadd.f32 %v3316_v31, %v3294_v32 }
 0xdd1   : > { %v3325_v36 = vadd.f32 %v4207_v33, %v3320_v34 }
 0xdd3   : > { %3326 = vst.msk [vmem:[%s1146_s12] sm:$0xff] %vm1173_vm1, %v3325_v36 }
 0xdd4   : > { %v3295_v42 = vpop.f32.mrf.mxu2  ;;  %v3318_v43 = vpop.f32.mrf.mxu3 }
 0xdd5 PF: > { %s5892_s13 = sld [smem:[#allocation41_spill]]  ;;  %s3340_s3 = sshll.u32 %s1146_s12, 4  ;;  %s3341_s3 = int_to_ptr.vmem [resolvable:$true] %s3340_s3 }
 0xdd6   : > { %s5894_s29 = sld [smem:[#allocation72_spill]]  ;;  %s3328_s9 = scalar_lea.sflag [#allocation5], %s5233_s17 }
 0xddb   : > { %s3845_s11 = sshll.u32 %s5892_s13, 3 }
 0xddc   : > { %s5895_s7 = smov %s5894_s29  ;;  %s3338_s23 = scalar_lea.hbm %s5894_s29, %s3845_s11 }
 0xddd   : > { %s3342_s30 = sshll.u32 %s3338_s23, 4  ;;  %s4654_s10 = scalar_lea.hbm %s5895_s7, 16  ;;  %s3343_s30 = int_to_ptr.hbm [resolvable:$true] %s3342_s30 }
 0xdde   : > { %s4648_s19 = sshra.s32 %s3343_s30, 4  ;;  %s4649_s19 = int_to_ptr.hbm [resolvable:$true] %s4648_s19 }
 0xddf   : > { %s4650_s1 = scalar_lea.hbm %s4649_s19, 8  ;;  %p4655_p10 = scmp.lt.s32.totalorder %s4649_s19, %s5895_s7 }
 0xde0   : > { %p4651_p11 = scmp.ne.s32.totalorder %s4649_s19, %s4650_s1  ;;  %p4656_p13 = scmp.lt.s32.totalorder %s4654_s10, %s4650_s1 }
 0xde2   : > { %p4652_p12 = pnand %p4651_p11, %p5076_p2  ;;  %p4657_p8 = por %p4656_p13, %p4655_p10 }
 0xde4   : > { %p4653_p6 = pneg %p4652_p12 }
 0xde6   : > { %p4658_p4 = pnand %p4657_p8, %p4653_p6 }
 0xde8   : > { %4661 = shalt.err (!%p4658_p4)
}
 0xde9   : > { %3917 = dma.vmem_to_hbm [thread:$0]  (%p5076_p2), %s3341_s3, 128, %s3343_s30, %s3328_s9  }
 0xdea PF: > { %s5896_s12 = sld [smem:[#allocation42_spill]] }
 0xdeb   : > { %s5897_s17 = sld [smem:[#allocation39_spill]] }
 0xdf0   : > { %p3978_p7 = scmp.ge.s32.totalorder %s5896_s12, 2 }
 0xdf1   : > { %s3354_s15 = sand.u32 1, %s5897_s17  }
 0xdf2   : > { %p3964_p5 = pnand %p3978_p7, %p5083_p0  ;;  %s3355_s14 = scalar_lea.sflag [#allocation5], %s3354_s15 }
 0xdf4   : > { %p3965_p3 = pneg %p3964_p5 }
 0xdf6   : > { %4743 = dma.done.wait (%p3965_p3), %s3355_s14, 128  }
 0xdf7   : > { %4745 = vsyncadd (%p3965_p3), %s3355_s14, 4294967168  ;;  %s53_s6 = sadd.s32 1, %s5896_s12   ;;  %s5899_s3 = sld [smem:[#allocation37_spill]] }
 0xdf8   : > { %p50_p1 = scmp.ge.s32.totalorder %s53_s6, 6   ;;  %s5900_s28 = sld [smem:[#allocation38_spill]] }
 0xdf9   : > { %s5901_s29 = sld [smem:[#allocation46_spill]]  ;;  %s5905_s30 = smov %s4764_s4 }
 0xdfa   : > { %s5902_s27 = sld [smem:[#allocation47_spill]]  ;;  %s5906_s4 = smov %s4768_s0 }
 0xdfb   : > { %s5903_s16 = sld [smem:[#allocation44_spill]]  ;;  %s5908_s23 = smov %s4780_s5 }
 0xdfc   : > { %s5904_s13 = sld [smem:[#allocation45_spill]]  ;;  %s5909_s1 = smov %s4784_s24 }
 0xdfe   :  { %52 = sbr.rel (!%p50_p1) target bundleno = 43 (0x2b), region = 292 }
 0xe00   : > { %s5907_s0 = smov %s5902_s27 }
 0xe01   : > { %s5910_s5 = smov %s5903_s16 }
 0xe02   : > { %s5911_s24 = smov %s5904_s13 }
 0xe03   :  { %3361 = vsyncpa [#allocation4], 1 }
 0xe04   :  { %3363 = vsyncpa [#allocation4 + $0x1], 1 }
 0xe05   :  { %3364 = vsyncpa [#allocation7], 1 }
 0xe06   :  { %3366 = vsyncpa [#allocation7 + $0x1], 1 }
 0xe07   :  { %3367 = vsyncpa [#allocation10], 1 }
 0xe08   :  { %3369 = vsyncpa [#allocation10 + $0x1], 1 }
 0xe09   :  { %3370 = vsyncpa [#allocation13], 1 }
 0xe0a   :  { %3372 = vsyncpa [#allocation13 + $0x1], 1 }
 0xe0b   :  { %3373 = vsyncpa [#allocation16], 1 }
 0xe0c   :  { %3375 = vsyncpa [#allocation16 + $0x1], 1 }
 0xe0d   :  { %3376 = vsyncpa [#allocation19], 1 }
 0xe0e   :  { %3377 = vsyncpa [#allocation22], 1 }
 0xe0f   :  { %3378 = vsyncpa [#allocation25], 1 }
 0xe10   :  { %3379 = vsyncpa [#allocation5], 1 }
 0xe11   :  { %3381 = vsyncpa [#allocation5 + $0x1], 1 }

</bundles_post_ra>
